<compile_context>
chip_gen: v7x
topology: tpu7x:2x2x1
jax: 0.10.0
libtpu: 0.0.40
codegen_flags: <defaults>
</compile_context>

<pallas_src>
import jax
import jax.numpy as jnp
from jax import lax
from jax.experimental import pallas as pl
from jax.experimental.pallas import tpu as pltpu


TIME_BLOCK = 8                      # timesteps per grid step of the recurrence
VMEM_LIMIT = 32 * 1024 * 1024       # safe on v5e/v6e/v7x


# ------------------------------ small helpers -------------------------------

def _round_up(x, m):
    return ((x + m - 1) // m) * m


def _largest_divisor(n, cap, mult):
    """Largest divisor of n that is a multiple of `mult` and <= cap."""
    best = mult
    d = mult
    top = min(n, cap)
    while d <= top:
        if n % d == 0:
            best = d
        d += mult
    return best


def _pick_tile(n, cap, mult, prefer):
    """Tile size for an n-sized axis.

    Prefer the largest divisor of n (multiple of `mult`, <= cap); if that is
    smaller than `prefer` (awkward factors -> tiny, store-inefficient tiles),
    return a lane-dense `prefer`-sized tile and let the caller pad n."""
    best = _largest_divisor(n, cap, mult)
    if best >= min(prefer, n, cap):
        return best
    return min(cap, prefer)


def _pad_gates(w, in_pad, Hp, H):
    """Pad a [in_dim, 3H] gate-blocked (r,z,n) weight to [in_pad, 3*Hp].

    Each gate block is zero-padded independently so gate slices stay at
    lane-aligned offsets k*Hp inside the kernel."""
    in_dim = w.shape[0]
    gates = jnp.split(w, 3, axis=1)
    padded = [jnp.pad(g, ((0, in_pad - in_dim), (0, Hp - H))) for g in gates]
    return jnp.concatenate(padded, axis=1)


def _pad_gate_bias(b, Hp, H):
    gates = jnp.split(b, 3, axis=1)
    padded = [jnp.pad(g, ((0, 0), (0, Hp - H))) for g in gates]
    return jnp.concatenate(padded, axis=1)


# ----------------------------- Pallas kernels -------------------------------

def linear_kernel(x_ref, w_ref, b_ref, o_ref):
    """o = x @ w + b for one (row-tile, col-tile) block.

    x is cast to bf16 in-kernel, w is pre-cast bf16; f32 accumulation."""
    x = x_ref[...].astype(jnp.bfloat16)
    o_ref[...] = (
        jnp.dot(x, w_ref[...], preferred_element_type=jnp.float32)
        + b_ref[...]
    ).astype(o_ref.dtype)


def gru_block_kernel(gi_ref, whh_ref, bhh_ref, h0_ref, ys_ref, h_scr):
    """Runs TT GRU timesteps per grid step (time-blocked serial recurrence).

    gi_ref:  [TT, Bp, 3Hp] f32   precomputed x_t @ W_ih^T + b_ih (streamed)
    whh_ref: [Hp, 3Hp]     bf16  hidden weights (VMEM-resident, const index_map)
    bhh_ref: [1, 3Hp]      f32   hidden bias    (resident)
    h0_ref:  [Bp, Hp]      f32   initial hidden (resident)
    ys_ref:  [TT, Bp, Hp]  f32   per-step hidden outputs
    h_scr:   [Bp, Hp]      f32   VMEM scratch carrying h across grid steps
    """
    @pl.when(pl.program_id(0) == 0)
    def _():
        h_scr[...] = h0_ref[...]

    Hp = h_scr.shape[-1]
    bhh = bhh_ref[...]                       # [1, 3Hp], hoisted (tiny)

    def step(t, h):
        gh = jnp.dot(h.astype(jnp.bfloat16), whh_ref[...],
                     preferred_element_type=jnp.float32) + bhh
        gi = gi_ref[t]                                       # [Bp, 3Hp]
        r = jax.nn.sigmoid(gi[:, 0:Hp] + gh[:, 0:Hp])
        z = jax.nn.sigmoid(gi[:, Hp:2 * Hp] + gh[:, Hp:2 * Hp])
        n = jnp.tanh(gi[:, 2 * Hp:3 * Hp] + r * gh[:, 2 * Hp:3 * Hp])
        h_new = n + z * (h - n)                              # == (1-z)*n + z*h
        ys_ref[t] = h_new.astype(ys_ref.dtype)
        return h_new

    # Unrolled loop over the TT timesteps of this block (h carried in vregs).
    h_scr[...] = lax.fori_loop(0, ys_ref.shape[0], step, h_scr[...],
                               unroll=True)


# --------------------------- pallas_call wrappers ---------------------------

def linear(x, w, b):
    """x: [M, K] f32; w: [K, N] bf16; b: [1, N] f32 -> [M, N] f32.

    Grid order: weight-column (N) axis OUTER, row axis INNER, so the weight
    tile index is constant across the inner loop and W is streamed from HBM
    exactly once per column tile."""
    M, K = x.shape
    N = w.shape[1]
    TM = _pick_tile(M, cap=256, mult=8, prefer=128)
    TN = _pick_tile(N, cap=512, mult=128, prefer=256)
    Mp, Np = _round_up(M, TM), _round_up(N, TN)
    if Mp != M:
        x = jnp.pad(x, ((0, Mp - M), (0, 0)))
    if Np != N:
        w = jnp.pad(w, ((0, 0), (0, Np - N)))
        b = jnp.pad(b, ((0, 0), (0, Np - N)))

    out = pl.pallas_call(
        linear_kernel,
        out_shape=jax.ShapeDtypeStruct((Mp, Np), jnp.float32),
        grid_spec=pltpu.PrefetchScalarGridSpec(
            num_scalar_prefetch=0,
            grid=(Np // TN, Mp // TM),               # N outer, rows inner
            in_specs=[
                pl.BlockSpec((TM, K), lambda j, i: (i, 0)),
                pl.BlockSpec((K, TN), lambda j, i: (0, j)),   # const over rows
                pl.BlockSpec((1, TN), lambda j, i: (0, j)),
            ],
            out_specs=pl.BlockSpec((TM, TN), lambda j, i: (i, j)),
        ),
        compiler_params=pltpu.CompilerParams(
            dimension_semantics=("parallel", "parallel"),
            vmem_limit_bytes=VMEM_LIMIT),
    )(x, w, b)
    if Mp != M or Np != N:
        out = out[:M, :N]
    return out
    # TODO(synk): tile the contraction (K) dim for very large K.


def gru_layer(gi_all, h0, w_hh, b_hh, tt):
    """Full recurrence of one GRU layer in a single pallas_call.

    gi_all: [Tp, Bp, 3Hp] f32 precomputed input gates; h0: [Bp, Hp] f32;
    w_hh: [Hp, 3Hp] bf16; b_hh: [1, 3Hp] f32.  Returns ys: [Tp, Bp, Hp] f32."""
    Tp, Bp, threeHp = gi_all.shape
    Hp = h0.shape[-1]
    return pl.pallas_call(
        gru_block_kernel,
        out_shape=jax.ShapeDtypeStruct((Tp, Bp, Hp), jnp.float32),
        grid_spec=pltpu.PrefetchScalarGridSpec(
            num_scalar_prefetch=0,
            grid=(Tp // tt,),
            in_specs=[
                pl.BlockSpec((tt, Bp, threeHp), lambda t: (t, 0, 0)),  # gi blk
                pl.BlockSpec((Hp, threeHp), lambda t: (0, 0)),         # W_hh
                pl.BlockSpec((1, threeHp), lambda t: (0, 0)),          # b_hh
                pl.BlockSpec((Bp, Hp), lambda t: (0, 0)),              # h0
            ],
            out_specs=pl.BlockSpec((tt, Bp, Hp), lambda t: (t, 0, 0)),
            scratch_shapes=[pltpu.VMEM((Bp, Hp), jnp.float32)],
        ),
        compiler_params=pltpu.CompilerParams(
            dimension_semantics=("arbitrary",),
            vmem_limit_bytes=VMEM_LIMIT),
    )(gi_all, w_hh, b_hh, h0)


# --------------------------- parameter preparation ---------------------------

def prepare_decoder_params(raw, E, H, V):
    """Pad (gate-blocked, lane-aligned) and bf16-cast weights ONCE, outside
    the jitted forward."""
    Ep = _round_up(E, 128)
    Hp = _round_up(H, 128)
    Vp = _round_up(V, 128)
    prepared = {
        "embedding": jnp.pad(raw["embedding"],
                             ((0, 0), (0, Ep - E))).astype(jnp.float32),
        "w_out": jnp.pad(raw["w_out_t"],
                         ((0, Hp - H), (0, Vp - V))).astype(jnp.bfloat16),
        "b_out": jnp.pad(raw["b_out"],
                         ((0, 0), (0, Vp - V))).astype(jnp.float32),
        "gru": [],
    }
    in_pad = Ep
    for (w_ih_t, w_hh_t, b_ih, b_hh) in raw["gru"]:
        prepared["gru"].append((
            _pad_gates(w_ih_t, in_pad, Hp, H).astype(jnp.bfloat16),
            _pad_gates(w_hh_t, Hp, Hp, H).astype(jnp.bfloat16),
            _pad_gate_bias(b_ih, Hp, H).astype(jnp.float32),
            _pad_gate_bias(b_hh, Hp, H).astype(jnp.float32),
        ))
        in_pad = Hp
    return prepared


# ------------------------------- Decoder ------------------------------------

def decoder_forward(prepared, tgt_input, context, tgt_vocab_size):
    """tgt_input: [B, T] int32; context: [num_layers, B, H] f32.

    Returns (logits [B, T, V], h_n [num_layers, B, H])."""
    B, T = tgt_input.shape
    H = context.shape[-1]
    Hp = prepared["gru"][0][1].shape[0]
    Vp = prepared["w_out"].shape[1]
    L = len(prepared["gru"])
    V = tgt_vocab_size

    Bp = _round_up(B, 8)
    Tp = _round_up(T, TIME_BLOCK)

    # Embedding lookup (plain-JAX gather) + time-major, padded layout.
    emb = jnp.take(prepared["embedding"], tgt_input, axis=0)   # [B, T, Ep]
    xs = jnp.transpose(emb, (1, 0, 2)).astype(jnp.float32)     # [T, B, Ep]
    xs = jnp.pad(xs, ((0, Tp - T), (0, Bp - B), (0, 0)))       # [Tp, Bp, Ep]

    h_finals = []
    for l in range(L):
        w_ih, w_hh, b_ih, b_hh = prepared["gru"][l]
        h0 = jnp.pad(context[l], ((0, Bp - B), (0, Hp - H)))   # [Bp, Hp]

        # Hoisted input projection: one batched matmul over all timesteps.
        gi = linear(xs.reshape(Tp * Bp, xs.shape[-1]), w_ih, b_ih)
        gi = gi.reshape(Tp, Bp, 3 * Hp)

        # Serial recurrence: single pallas_call, time-blocked grid.
        ys = gru_layer(gi, h0, w_hh, b_hh, TIME_BLOCK)         # [Tp, Bp, Hp]
        h_finals.append(ys[T - 1, :B, :H])
        xs = ys

    # Output vocabulary projection over all Tp*Bp rows at once.
    logits_p = linear(xs.reshape(Tp * Bp, Hp),
                      prepared["w_out"], prepared["b_out"])    # [Tp*Bp, Vp]
    logits_p = logits_p.reshape(Tp, Bp, Vp)
    logits = jnp.transpose(logits_p[:T, :B, :V], (1, 0, 2))    # [B, T, V]

    h_n = jnp.stack(h_finals, axis=0)                          # [L, B, H]
    return logits, h_n


# --------------------------- reference (pure JAX) ---------------------------

def _ref_forward(params, tgt_input, context):
    emb = jnp.take(params["embedding"], tgt_input, axis=0)
    xs = jnp.transpose(emb, (1, 0, 2)).astype(jnp.float32)
    h_finals = []
    for l in range(len(params["gru"])):
        w_ih_t, w_hh_t, b_ih, b_hh = params["gru"][l]

        def step(h, x_t, w_ih_t=w_ih_t, w_hh_t=w_hh_t, b_ih=b_ih, b_hh=b_hh):
            gi = x_t @ w_ih_t + b_ih
            gh = h @ w_hh_t + b_hh
            H = h.shape[-1]
            r = jax.nn.sigmoid(gi[:, :H] + gh[:, :H])
            z = jax.nn.sigmoid(gi[:, H:2 * H] + gh[:, H:2 * H])
            n = jnp.tanh(gi[:, 2 * H:] + r * gh[:, 2 * H:])
            h_new = (1.0 - z) * n + z * h
            return h_new, h_new

        h_l, xs = jax.lax.scan(step, context[l], xs)
        h_finals.append(h_l)
    outputs = jnp.transpose(xs, (1, 0, 2))
    B, T, H = outputs.shape
    logits = (outputs.reshape(B * T, H) @ params["w_out_t"]
              + params["b_out"]).reshape(B, T, -1)
    return logits, jnp.stack(h_finals, axis=0)


# ---------------------------------- main -------------------------------------

if __name__ == "__main__":
    # Small, demo-scale config (same structure as Config, scaled down).
    B = 4            # batch_size
    T = 8            # tgt_max_length
    E = 32           # tgt_embedding_dim
    H = 32           # decoder_hidden_dim
    V = 64           # tgt_vocab_size
    L = 2            # decoder_num_layers

    key = jax.random.PRNGKey(0)
    keys = jax.random.split(key, 4 + 4 * L)

    params = {
        "embedding": 0.1 * jax.random.normal(keys[0], (V, E), jnp.float32),
        "w_out_t":   0.1 * jax.random.normal(keys[1], (H, V), jnp.float32),
        "b_out":     0.1 * jax.random.normal(keys[2], (1, V), jnp.float32),
        "gru": [],
    }
    for l in range(L):
        in_dim = E if l == 0 else H
        k = keys[4 + 4 * l: 4 + 4 * (l + 1)]
        params["gru"].append((
            0.1 * jax.random.normal(k[0], (in_dim, 3 * H), jnp.float32),  # w_ih^T
            0.1 * jax.random.normal(k[1], (H, 3 * H), jnp.float32),       # w_hh^T
            0.1 * jax.random.normal(k[2], (1, 3 * H), jnp.float32),       # b_ih
            0.1 * jax.random.normal(k[3], (1, 3 * H), jnp.float32),       # b_hh
        ))

    tgt_input = jax.random.randint(keys[3], (B, T), 0, V, dtype=jnp.int32)
    context = 0.1 * jax.random.normal(jax.random.PRNGKey(1), (L, B, H),
                                      jnp.float32)

    prepared = prepare_decoder_params(params, E, H, V)   # pad + bf16 cast once

    fwd = jax.jit(decoder_forward, static_argnames=("tgt_vocab_size",))
    logits, h_n = fwd(prepared, tgt_input, context, tgt_vocab_size=V)
    logits = jax.block_until_ready(logits)
    h_n = jax.block_until_ready(h_n)

    ref_logits, ref_h_n = _ref_forward(params, tgt_input, context)
    assert logits.shape == (B, T, V) and h_n.shape == (L, B, H)
    # Matmul operands are bf16 (f32 accumulation/state), so tolerance is set
    # for bf16 operand quantization rather than pure-f32 equality.
    assert jnp.allclose(logits, ref_logits, atol=2e-2, rtol=2e-2)
    assert jnp.allclose(h_n, ref_h_n, atol=2e-2, rtol=2e-2)

    print("KERNEL_OK")
</pallas_src>

<mosaic_0001>
module attributes {stable_mosaic.version = 11 : i64} {
  func.func @linear_kernel(%arg0: i32, %arg1: i32, %arg2: memref<64x128xf32, #tpu.memory_space<vmem>>, %arg3: memref<128x384xbf16, #tpu.memory_space<vmem>>, %arg4: memref<1x384xf32, #tpu.memory_space<vmem>>, %arg5: memref<64x384xf32, #tpu.memory_space<vmem>>) attributes {dimension_semantics = [#tpu.dimension_semantics<parallel>, #tpu.dimension_semantics<parallel>], iteration_bounds = array<i64: 1, 1>, scalar_prefetch = 0 : i64, scratch_operands = 0 : i64, tpu.core_type = #tpu.core_type<tc>, window_params = [{transform_indices = @transform_0, window_bounds = array<i64: 64, 128>}, {transform_indices = @transform_1, window_bounds = array<i64: 128, 384>}, {transform_indices = @transform_2, window_bounds = array<i64: 1, 384>}, {transform_indices = @transform_3, window_bounds = array<i64: 64, 384>}]} {
    %c0 = arith.constant 0 : index
    %c0_0 = arith.constant 0 : index
    %0 = vector.load %arg2[%c0, %c0_0] : memref<64x128xf32, #tpu.memory_space<vmem>>, vector<64x128xf32>
    %1 = arith.truncf %0 : vector<64x128xf32> to vector<64x128xbf16>
    %c0_1 = arith.constant 0 : index
    %c0_2 = arith.constant 0 : index
    %2 = vector.load %arg3[%c0_1, %c0_2] : memref<128x384xbf16, #tpu.memory_space<vmem>>, vector<128x384xbf16>
    %cst = arith.constant dense<0.000000e+00> : vector<64x384xf32>
    %3 = tpu.matmul %1, %2, %cst {dimension_numbers = #tpu.dot_dimension_numbers<[1], [0], [0], [1], [0, 0, 1, 1], [], []>} : vector<64x128xbf16>, vector<128x384xbf16>, vector<64x384xf32> -> vector<64x384xf32>
    %c0_3 = arith.constant 0 : index
    %c0_4 = arith.constant 0 : index
    %4 = vector.load %arg4[%c0_3, %c0_4] : memref<1x384xf32, #tpu.memory_space<vmem>>, vector<1x384xf32>
    %5 = vector.broadcast %4 : vector<1x384xf32> to vector<64x384xf32>
    %6 = arith.addf %3, %5 : vector<64x384xf32>
    %c0_5 = arith.constant 0 : index
    %c0_6 = arith.constant 0 : index
    %7 = vector.load %arg5[%c0_5, %c0_6] : memref<64x384xf32, #tpu.memory_space<vmem>>, vector<64x384xf32>
    tpu.vector_store %arg5[%c0_5, %c0_6], %6 {strides = array<i32>} : memref<64x384xf32, #tpu.memory_space<vmem>>, vector<64x384xf32>,
    return
  }
  func.func @transform_0(%arg0: i32, %arg1: i32) -> (i32, i32) {
    %c0_i32 = arith.constant 0 : i32
    %c0_i32_0 = arith.constant 0 : i32
    return %arg1, %c0_i32 : i32, i32
  }
  func.func @transform_1(%arg0: i32, %arg1: i32) -> (i32, i32) {
    %c0_i32 = arith.constant 0 : i32
    %c0_i32_0 = arith.constant 0 : i32
    return %c0_i32, %arg0 : i32, i32
  }
  func.func @transform_2(%arg0: i32, %arg1: i32) -> (i32, i32) {
    %c0_i32 = arith.constant 0 : i32
    %c0_i32_0 = arith.constant 0 : i32
    return %c0_i32, %arg0 : i32, i32
  }
  func.func @transform_3(%arg0: i32, %arg1: i32) -> (i32, i32) {
    %c0_i32 = arith.constant 0 : i32
    return %arg1, %arg0 : i32, i32
  }
}

module attributes {stable_mosaic.version = 11 : i64} {
  func.func @gru_block_kernel(%arg0: i32, %arg1: memref<8x8x384xf32, #tpu.memory_space<vmem>>, %arg2: memref<128x384xbf16, #tpu.memory_space<vmem>>, %arg3: memref<1x384xf32, #tpu.memory_space<vmem>>, %arg4: memref<8x128xf32, #tpu.memory_space<vmem>>, %arg5: memref<8x8x128xf32, #tpu.memory_space<vmem>>, %arg6: memref<8x128xf32, #tpu.memory_space<vmem>>) attributes {dimension_semantics = [#tpu.dimension_semantics<arbitrary>], iteration_bounds = array<i64: 1>, scalar_prefetch = 0 : i64, scratch_operands = 1 : i64, tpu.core_type = #tpu.core_type<tc>, window_params = [{transform_indices = @transform_0, window_bounds = array<i64: 8, 8, 384>}, {pipeline_mode = #tpu.pipeline_mode<synchronous>, transform_indices = @transform_1, window_bounds = array<i64: 128, 384>}, {pipeline_mode = #tpu.pipeline_mode<synchronous>, transform_indices = @transform_2, window_bounds = array<i64: 1, 384>}, {pipeline_mode = #tpu.pipeline_mode<synchronous>, transform_indices = @transform_3, window_bounds = array<i64: 8, 128>}, {transform_indices = @transform_4, window_bounds = array<i64: 8, 8, 128>}]} {
    %c0_i32 = arith.constant 0 : i32
    %0 = arith.cmpi eq, %arg0, %c0_i32 : i32
    %1 = arith.extui %0 : i1 to i32
    %c0_i32_0 = arith.constant 0 : i32
    %2 = arith.cmpi ne, %1, %c0_i32_0 : i32
    scf.if %2 {
      %c0_78 = arith.constant 0 : index
      %c0_79 = arith.constant 0 : index
      %294 = vector.load %arg4[%c0_78, %c0_79] : memref<8x128xf32, #tpu.memory_space<vmem>>, vector<8x128xf32>
      %c0_80 = arith.constant 0 : index
      %c0_81 = arith.constant 0 : index
      %295 = vector.load %arg6[%c0_80, %c0_81] : memref<8x128xf32, #tpu.memory_space<vmem>>, vector<8x128xf32>
      tpu.vector_store %arg6[%c0_80, %c0_81], %294 {strides = array<i32>} : memref<8x128xf32, #tpu.memory_space<vmem>>, vector<8x128xf32>,
    } else {
    }
    %c0 = arith.constant 0 : index
    %c0_1 = arith.constant 0 : index
    %3 = vector.load %arg3[%c0, %c0_1] : memref<1x384xf32, #tpu.memory_space<vmem>>, vector<1x384xf32>
    %c0_2 = arith.constant 0 : index
    %c0_3 = arith.constant 0 : index
    %4 = vector.load %arg6[%c0_2, %c0_3] : memref<8x128xf32, #tpu.memory_space<vmem>>, vector<8x128xf32>
    %c0_i32_4 = arith.constant 0 : i32
    %5 = arith.truncf %4 : vector<8x128xf32> to vector<8x128xbf16>
    %c0_5 = arith.constant 0 : index
    %c0_6 = arith.constant 0 : index
    %6 = vector.load %arg2[%c0_5, %c0_6] : memref<128x384xbf16, #tpu.memory_space<vmem>>, vector<128x384xbf16>
    %cst = arith.constant dense<0.000000e+00> : vector<8x384xf32>
    %7 = tpu.matmul %5, %6, %cst {dimension_numbers = #tpu.dot_dimension_numbers<[1], [0], [0], [1], [0, 0, 1, 1], [], []>} : vector<8x128xbf16>, vector<128x384xbf16>, vector<8x384xf32> -> vector<8x384xf32>
    %8 = vector.broadcast %3 : vector<1x384xf32> to vector<8x384xf32>
    %9 = arith.addf %7, %8 : vector<8x384xf32>
    %10 = arith.index_cast %c0_i32_4 : i32 to index
    %c0_7 = arith.constant 0 : index
    %c0_8 = arith.constant 0 : index
    %11 = vector.load %arg1[%10, %c0_7, %c0_8] : memref<8x8x384xf32, #tpu.memory_space<vmem>>, vector<1x8x384xf32>
    %12 = vector.shape_cast %11 : vector<1x8x384xf32> to vector<8x384xf32>
    %13 = vector.extract_strided_slice %12 {offsets = [0, 0], sizes = [8, 128], strides = [1, 1]} : vector<8x384xf32> to vector<8x128xf32>
    %14 = vector.extract_strided_slice %9 {offsets = [0, 0], sizes = [8, 128], strides = [1, 1]} : vector<8x384xf32> to vector<8x128xf32>
    %15 = arith.addf %13, %14 : vector<8x128xf32>
    %16 = arith.negf %15 : vector<8x128xf32>
    %17 = math.exp %16 : vector<8x128xf32>
    %cst_9 = arith.constant 1.000000e+00 : f32
    %18 = vector.broadcast %cst_9 : f32 to vector<8x128xf32>
    %19 = arith.addf %18, %17 : vector<8x128xf32>
    %20 = arith.divf %18, %19 : vector<8x128xf32>
    %21 = vector.extract_strided_slice %12 {offsets = [0, 128], sizes = [8, 128], strides = [1, 1]} : vector<8x384xf32> to vector<8x128xf32>
    %22 = vector.extract_strided_slice %9 {offsets = [0, 128], sizes = [8, 128], strides = [1, 1]} : vector<8x384xf32> to vector<8x128xf32>
    %23 = arith.addf %21, %22 : vector<8x128xf32>
    %24 = arith.negf %23 : vector<8x128xf32>
    %25 = math.exp %24 : vector<8x128xf32>
    %cst_10 = arith.constant 1.000000e+00 : f32
    %26 = vector.broadcast %cst_10 : f32 to vector<8x128xf32>
    %27 = arith.addf %26, %25 : vector<8x128xf32>
    %28 = arith.divf %26, %27 : vector<8x128xf32>
    %29 = vector.extract_strided_slice %12 {offsets = [0, 256], sizes = [8, 128], strides = [1, 1]} : vector<8x384xf32> to vector<8x128xf32>
    %30 = vector.extract_strided_slice %9 {offsets = [0, 256], sizes = [8, 128], strides = [1, 1]} : vector<8x384xf32> to vector<8x128xf32>
    %31 = arith.mulf %20, %30 : vector<8x128xf32>
    %32 = arith.addf %29, %31 : vector<8x128xf32>
    %33 = math.tanh %32 : vector<8x128xf32>
    %34 = arith.subf %4, %33 : vector<8x128xf32>
    %35 = arith.mulf %28, %34 : vector<8x128xf32>
    %36 = arith.addf %33, %35 : vector<8x128xf32>
    %37 = arith.index_cast %c0_i32_4 : i32 to index
    %c0_11 = arith.constant 0 : index
    %c0_12 = arith.constant 0 : index
    %38 = vector.load %arg5[%37, %c0_11, %c0_12] : memref<8x8x128xf32, #tpu.memory_space<vmem>>, vector<1x8x128xf32>
    %39 = vector.shape_cast %38 : vector<1x8x128xf32> to vector<8x128xf32>
    %40 = vector.shape_cast %36 : vector<8x128xf32> to vector<1x8x128xf32>
    tpu.vector_store %arg5[%37, %c0_11, %c0_12], %40 {strides = array<i32>} : memref<8x8x128xf32, #tpu.memory_space<vmem>>, vector<1x8x128xf32>,
    %c1_i32 = arith.constant 1 : i32
    %41 = arith.truncf %36 : vector<8x128xf32> to vector<8x128xbf16>
    %c0_13 = arith.constant 0 : index
    %c0_14 = arith.constant 0 : index
    %42 = vector.load %arg2[%c0_13, %c0_14] : memref<128x384xbf16, #tpu.memory_space<vmem>>, vector<128x384xbf16>
    %cst_15 = arith.constant dense<0.000000e+00> : vector<8x384xf32>
    %43 = tpu.matmul %41, %42, %cst_15 {dimension_numbers = #tpu.dot_dimension_numbers<[1], [0], [0], [1], [0, 0, 1, 1], [], []>} : vector<8x128xbf16>, vector<128x384xbf16>, vector<8x384xf32> -> vector<8x384xf32>
    %44 = vector.broadcast %3 : vector<1x384xf32> to vector<8x384xf32>
    %45 = arith.addf %43, %44 : vector<8x384xf32>
    %46 = arith.index_cast %c1_i32 : i32 to index
    %c0_16 = arith.constant 0 : index
    %c0_17 = arith.constant 0 : index
    %47 = vector.load %arg1[%46, %c0_16, %c0_17] : memref<8x8x384xf32, #tpu.memory_space<vmem>>, vector<1x8x384xf32>
    %48 = vector.shape_cast %47 : vector<1x8x384xf32> to vector<8x384xf32>
    %49 = vector.extract_strided_slice %48 {offsets = [0, 0], sizes = [8, 128], strides = [1, 1]} : vector<8x384xf32> to vector<8x128xf32>
    %50 = vector.extract_strided_slice %45 {offsets = [0, 0], sizes = [8, 128], strides = [1, 1]} : vector<8x384xf32> to vector<8x128xf32>
    %51 = arith.addf %49, %50 : vector<8x128xf32>
    %52 = arith.negf %51 : vector<8x128xf32>
    %53 = math.exp %52 : vector<8x128xf32>
    %cst_18 = arith.constant 1.000000e+00 : f32
    %54 = vector.broadcast %cst_18 : f32 to vector<8x128xf32>
    %55 = arith.addf %54, %53 : vector<8x128xf32>
    %56 = arith.divf %54, %55 : vector<8x128xf32>
    %57 = vector.extract_strided_slice %48 {offsets = [0, 128], sizes = [8, 128], strides = [1, 1]} : vector<8x384xf32> to vector<8x128xf32>
    %58 = vector.extract_strided_slice %45 {offsets = [0, 128], sizes = [8, 128], strides = [1, 1]} : vector<8x384xf32> to vector<8x128xf32>
    %59 = arith.addf %57, %58 : vector<8x128xf32>
    %60 = arith.negf %59 : vector<8x128xf32>
    %61 = math.exp %60 : vector<8x128xf32>
    %cst_19 = arith.constant 1.000000e+00 : f32
    %62 = vector.broadcast %cst_19 : f32 to vector<8x128xf32>
    %63 = arith.addf %62, %61 : vector<8x128xf32>
    %64 = arith.divf %62, %63 : vector<8x128xf32>
    %65 = vector.extract_strided_slice %48 {offsets = [0, 256], sizes = [8, 128], strides = [1, 1]} : vector<8x384xf32> to vector<8x128xf32>
    %66 = vector.extract_strided_slice %45 {offsets = [0, 256], sizes = [8, 128], strides = [1, 1]} : vector<8x384xf32> to vector<8x128xf32>
    %67 = arith.mulf %56, %66 : vector<8x128xf32>
    %68 = arith.addf %65, %67 : vector<8x128xf32>
    %69 = math.tanh %68 : vector<8x128xf32>
    %70 = arith.subf %36, %69 : vector<8x128xf32>
    %71 = arith.mulf %64, %70 : vector<8x128xf32>
    %72 = arith.addf %69, %71 : vector<8x128xf32>
    %73 = arith.index_cast %c1_i32 : i32 to index
    %c0_20 = arith.constant 0 : index
    %c0_21 = arith.constant 0 : index
    %74 = vector.load %arg5[%73, %c0_20, %c0_21] : memref<8x8x128xf32, #tpu.memory_space<vmem>>, vector<1x8x128xf32>
    %75 = vector.shape_cast %74 : vector<1x8x128xf32> to vector<8x128xf32>
    %76 = vector.shape_cast %72 : vector<8x128xf32> to vector<1x8x128xf32>
    tpu.vector_store %arg5[%73, %c0_20, %c0_21], %76 {strides = array<i32>} : memref<8x8x128xf32, #tpu.memory_space<vmem>>, vector<1x8x128xf32>,
    %c2_i32 = arith.constant 2 : i32
    %77 = arith.truncf %72 : vector<8x128xf32> to vector<8x128xbf16>
    %c0_22 = arith.constant 0 : index
    %c0_23 = arith.constant 0 : index
    %78 = vector.load %arg2[%c0_22, %c0_23] : memref<128x384xbf16, #tpu.memory_space<vmem>>, vector<128x384xbf16>
    %cst_24 = arith.constant dense<0.000000e+00> : vector<8x384xf32>
    %79 = tpu.matmul %77, %78, %cst_24 {dimension_numbers = #tpu.dot_dimension_numbers<[1], [0], [0], [1], [0, 0, 1, 1], [], []>} : vector<8x128xbf16>, vector<128x384xbf16>, vector<8x384xf32> -> vector<8x384xf32>
    %80 = vector.broadcast %3 : vector<1x384xf32> to vector<8x384xf32>
    %81 = arith.addf %79, %80 : vector<8x384xf32>
    %82 = arith.index_cast %c2_i32 : i32 to index
    %c0_25 = arith.constant 0 : index
    %c0_26 = arith.constant 0 : index
    %83 = vector.load %arg1[%82, %c0_25, %c0_26] : memref<8x8x384xf32, #tpu.memory_space<vmem>>, vector<1x8x384xf32>
    %84 = vector.shape_cast %83 : vector<1x8x384xf32> to vector<8x384xf32>
    %85 = vector.extract_strided_slice %84 {offsets = [0, 0], sizes = [8, 128], strides = [1, 1]} : vector<8x384xf32> to vector<8x128xf32>
    %86 = vector.extract_strided_slice %81 {offsets = [0, 0], sizes = [8, 128], strides = [1, 1]} : vector<8x384xf32> to vector<8x128xf32>
    %87 = arith.addf %85, %86 : vector<8x128xf32>
    %88 = arith.negf %87 : vector<8x128xf32>
    %89 = math.exp %88 : vector<8x128xf32>
    %cst_27 = arith.constant 1.000000e+00 : f32
    %90 = vector.broadcast %cst_27 : f32 to vector<8x128xf32>
    %91 = arith.addf %90, %89 : vector<8x128xf32>
    %92 = arith.divf %90, %91 : vector<8x128xf32>
    %93 = vector.extract_strided_slice %84 {offsets = [0, 128], sizes = [8, 128], strides = [1, 1]} : vector<8x384xf32> to vector<8x128xf32>
    %94 = vector.extract_strided_slice %81 {offsets = [0, 128], sizes = [8, 128], strides = [1, 1]} : vector<8x384xf32> to vector<8x128xf32>
    %95 = arith.addf %93, %94 : vector<8x128xf32>
    %96 = arith.negf %95 : vector<8x128xf32>
    %97 = math.exp %96 : vector<8x128xf32>
    %cst_28 = arith.constant 1.000000e+00 : f32
    %98 = vector.broadcast %cst_28 : f32 to vector<8x128xf32>
    %99 = arith.addf %98, %97 : vector<8x128xf32>
    %100 = arith.divf %98, %99 : vector<8x128xf32>
    %101 = vector.extract_strided_slice %84 {offsets = [0, 256], sizes = [8, 128], strides = [1, 1]} : vector<8x384xf32> to vector<8x128xf32>
    %102 = vector.extract_strided_slice %81 {offsets = [0, 256], sizes = [8, 128], strides = [1, 1]} : vector<8x384xf32> to vector<8x128xf32>
    %103 = arith.mulf %92, %102 : vector<8x128xf32>
    %104 = arith.addf %101, %103 : vector<8x128xf32>
    %105 = math.tanh %104 : vector<8x128xf32>
    %106 = arith.subf %72, %105 : vector<8x128xf32>
    %107 = arith.mulf %100, %106 : vector<8x128xf32>
    %108 = arith.addf %105, %107 : vector<8x128xf32>
    %109 = arith.index_cast %c2_i32 : i32 to index
    %c0_29 = arith.constant 0 : index
    %c0_30 = arith.constant 0 : index
    %110 = vector.load %arg5[%109, %c0_29, %c0_30] : memref<8x8x128xf32, #tpu.memory_space<vmem>>, vector<1x8x128xf32>
    %111 = vector.shape_cast %110 : vector<1x8x128xf32> to vector<8x128xf32>
    %112 = vector.shape_cast %108 : vector<8x128xf32> to vector<1x8x128xf32>
    tpu.vector_store %arg5[%109, %c0_29, %c0_30], %112 {strides = array<i32>} : memref<8x8x128xf32, #tpu.memory_space<vmem>>, vector<1x8x128xf32>,
    %c3_i32 = arith.constant 3 : i32
    %113 = arith.truncf %108 : vector<8x128xf32> to vector<8x128xbf16>
    %c0_31 = arith.constant 0 : index
    %c0_32 = arith.constant 0 : index
    %114 = vector.load %arg2[%c0_31, %c0_32] : memref<128x384xbf16, #tpu.memory_space<vmem>>, vector<128x384xbf16>
    %cst_33 = arith.constant dense<0.000000e+00> : vector<8x384xf32>
    %115 = tpu.matmul %113, %114, %cst_33 {dimension_numbers = #tpu.dot_dimension_numbers<[1], [0], [0], [1], [0, 0, 1, 1], [], []>} : vector<8x128xbf16>, vector<128x384xbf16>, vector<8x384xf32> -> vector<8x384xf32>
    %116 = vector.broadcast %3 : vector<1x384xf32> to vector<8x384xf32>
    %117 = arith.addf %115, %116 : vector<8x384xf32>
    %118 = arith.index_cast %c3_i32 : i32 to index
    %c0_34 = arith.constant 0 : index
    %c0_35 = arith.constant 0 : index
    %119 = vector.load %arg1[%118, %c0_34, %c0_35] : memref<8x8x384xf32, #tpu.memory_space<vmem>>, vector<1x8x384xf32>
    %120 = vector.shape_cast %119 : vector<1x8x384xf32> to vector<8x384xf32>
    %121 = vector.extract_strided_slice %120 {offsets = [0, 0], sizes = [8, 128], strides = [1, 1]} : vector<8x384xf32> to vector<8x128xf32>
    %122 = vector.extract_strided_slice %117 {offsets = [0, 0], sizes = [8, 128], strides = [1, 1]} : vector<8x384xf32> to vector<8x128xf32>
    %123 = arith.addf %121, %122 : vector<8x128xf32>
    %124 = arith.negf %123 : vector<8x128xf32>
    %125 = math.exp %124 : vector<8x128xf32>
    %cst_36 = arith.constant 1.000000e+00 : f32
    %126 = vector.broadcast %cst_36 : f32 to vector<8x128xf32>
    %127 = arith.addf %126, %125 : vector<8x128xf32>
    %128 = arith.divf %126, %127 : vector<8x128xf32>
    %129 = vector.extract_strided_slice %120 {offsets = [0, 128], sizes = [8, 128], strides = [1, 1]} : vector<8x384xf32> to vector<8x128xf32>
    %130 = vector.extract_strided_slice %117 {offsets = [0, 128], sizes = [8, 128], strides = [1, 1]} : vector<8x384xf32> to vector<8x128xf32>
    %131 = arith.addf %129, %130 : vector<8x128xf32>
    %132 = arith.negf %131 : vector<8x128xf32>
    %133 = math.exp %132 : vector<8x128xf32>
    %cst_37 = arith.constant 1.000000e+00 : f32
    %134 = vector.broadcast %cst_37 : f32 to vector<8x128xf32>
    %135 = arith.addf %134, %133 : vector<8x128xf32>
    %136 = arith.divf %134, %135 : vector<8x128xf32>
    %137 = vector.extract_strided_slice %120 {offsets = [0, 256], sizes = [8, 128], strides = [1, 1]} : vector<8x384xf32> to vector<8x128xf32>
    %138 = vector.extract_strided_slice %117 {offsets = [0, 256], sizes = [8, 128], strides = [1, 1]} : vector<8x384xf32> to vector<8x128xf32>
    %139 = arith.mulf %128, %138 : vector<8x128xf32>
    %140 = arith.addf %137, %139 : vector<8x128xf32>
    %141 = math.tanh %140 : vector<8x128xf32>
    %142 = arith.subf %108, %141 : vector<8x128xf32>
    %143 = arith.mulf %136, %142 : vector<8x128xf32>
    %144 = arith.addf %141, %143 : vector<8x128xf32>
    %145 = arith.index_cast %c3_i32 : i32 to index
    %c0_38 = arith.constant 0 : index
    %c0_39 = arith.constant 0 : index
    %146 = vector.load %arg5[%145, %c0_38, %c0_39] : memref<8x8x128xf32, #tpu.memory_space<vmem>>, vector<1x8x128xf32>
    %147 = vector.shape_cast %146 : vector<1x8x128xf32> to vector<8x128xf32>
    %148 = vector.shape_cast %144 : vector<8x128xf32> to vector<1x8x128xf32>
    tpu.vector_store %arg5[%145, %c0_38, %c0_39], %148 {strides = array<i32>} : memref<8x8x128xf32, #tpu.memory_space<vmem>>, vector<1x8x128xf32>,
    %c4_i32 = arith.constant 4 : i32
    %149 = arith.truncf %144 : vector<8x128xf32> to vector<8x128xbf16>
    %c0_40 = arith.constant 0 : index
    %c0_41 = arith.constant 0 : index
    %150 = vector.load %arg2[%c0_40, %c0_41] : memref<128x384xbf16, #tpu.memory_space<vmem>>, vector<128x384xbf16>
    %cst_42 = arith.constant dense<0.000000e+00> : vector<8x384xf32>
    %151 = tpu.matmul %149, %150, %cst_42 {dimension_numbers = #tpu.dot_dimension_numbers<[1], [0], [0], [1], [0, 0, 1, 1], [], []>} : vector<8x128xbf16>, vector<128x384xbf16>, vector<8x384xf32> -> vector<8x384xf32>
    %152 = vector.broadcast %3 : vector<1x384xf32> to vector<8x384xf32>
    %153 = arith.addf %151, %152 : vector<8x384xf32>
    %154 = arith.index_cast %c4_i32 : i32 to index
    %c0_43 = arith.constant 0 : index
    %c0_44 = arith.constant 0 : index
    %155 = vector.load %arg1[%154, %c0_43, %c0_44] : memref<8x8x384xf32, #tpu.memory_space<vmem>>, vector<1x8x384xf32>
    %156 = vector.shape_cast %155 : vector<1x8x384xf32> to vector<8x384xf32>
    %157 = vector.extract_strided_slice %156 {offsets = [0, 0], sizes = [8, 128], strides = [1, 1]} : vector<8x384xf32> to vector<8x128xf32>
    %158 = vector.extract_strided_slice %153 {offsets = [0, 0], sizes = [8, 128], strides = [1, 1]} : vector<8x384xf32> to vector<8x128xf32>
    %159 = arith.addf %157, %158 : vector<8x128xf32>
    %160 = arith.negf %159 : vector<8x128xf32>
    %161 = math.exp %160 : vector<8x128xf32>
    %cst_45 = arith.constant 1.000000e+00 : f32
    %162 = vector.broadcast %cst_45 : f32 to vector<8x128xf32>
    %163 = arith.addf %162, %161 : vector<8x128xf32>
    %164 = arith.divf %162, %163 : vector<8x128xf32>
    %165 = vector.extract_strided_slice %156 {offsets = [0, 128], sizes = [8, 128], strides = [1, 1]} : vector<8x384xf32> to vector<8x128xf32>
    %166 = vector.extract_strided_slice %153 {offsets = [0, 128], sizes = [8, 128], strides = [1, 1]} : vector<8x384xf32> to vector<8x128xf32>
    %167 = arith.addf %165, %166 : vector<8x128xf32>
    %168 = arith.negf %167 : vector<8x128xf32>
    %169 = math.exp %168 : vector<8x128xf32>
    %cst_46 = arith.constant 1.000000e+00 : f32
    %170 = vector.broadcast %cst_46 : f32 to vector<8x128xf32>
    %171 = arith.addf %170, %169 : vector<8x128xf32>
    %172 = arith.divf %170, %171 : vector<8x128xf32>
    %173 = vector.extract_strided_slice %156 {offsets = [0, 256], sizes = [8, 128], strides = [1, 1]} : vector<8x384xf32> to vector<8x128xf32>
    %174 = vector.extract_strided_slice %153 {offsets = [0, 256], sizes = [8, 128], strides = [1, 1]} : vector<8x384xf32> to vector<8x128xf32>
    %175 = arith.mulf %164, %174 : vector<8x128xf32>
    %176 = arith.addf %173, %175 : vector<8x128xf32>
    %177 = math.tanh %176 : vector<8x128xf32>
    %178 = arith.subf %144, %177 : vector<8x128xf32>
    %179 = arith.mulf %172, %178 : vector<8x128xf32>
    %180 = arith.addf %177, %179 : vector<8x128xf32>
    %181 = arith.index_cast %c4_i32 : i32 to index
    %c0_47 = arith.constant 0 : index
    %c0_48 = arith.constant 0 : index
    %182 = vector.load %arg5[%181, %c0_47, %c0_48] : memref<8x8x128xf32, #tpu.memory_space<vmem>>, vector<1x8x128xf32>
    %183 = vector.shape_cast %182 : vector<1x8x128xf32> to vector<8x128xf32>
    %184 = vector.shape_cast %180 : vector<8x128xf32> to vector<1x8x128xf32>
    tpu.vector_store %arg5[%181, %c0_47, %c0_48], %184 {strides = array<i32>} : memref<8x8x128xf32, #tpu.memory_space<vmem>>, vector<1x8x128xf32>,
    %c5_i32 = arith.constant 5 : i32
    %185 = arith.truncf %180 : vector<8x128xf32> to vector<8x128xbf16>
    %c0_49 = arith.constant 0 : index
    %c0_50 = arith.constant 0 : index
    %186 = vector.load %arg2[%c0_49, %c0_50] : memref<128x384xbf16, #tpu.memory_space<vmem>>, vector<128x384xbf16>
    %cst_51 = arith.constant dense<0.000000e+00> : vector<8x384xf32>
    %187 = tpu.matmul %185, %186, %cst_51 {dimension_numbers = #tpu.dot_dimension_numbers<[1], [0], [0], [1], [0, 0, 1, 1], [], []>} : vector<8x128xbf16>, vector<128x384xbf16>, vector<8x384xf32> -> vector<8x384xf32>
    %188 = vector.broadcast %3 : vector<1x384xf32> to vector<8x384xf32>
    %189 = arith.addf %187, %188 : vector<8x384xf32>
    %190 = arith.index_cast %c5_i32 : i32 to index
    %c0_52 = arith.constant 0 : index
    %c0_53 = arith.constant 0 : index
    %191 = vector.load %arg1[%190, %c0_52, %c0_53] : memref<8x8x384xf32, #tpu.memory_space<vmem>>, vector<1x8x384xf32>
    %192 = vector.shape_cast %191 : vector<1x8x384xf32> to vector<8x384xf32>
    %193 = vector.extract_strided_slice %192 {offsets = [0, 0], sizes = [8, 128], strides = [1, 1]} : vector<8x384xf32> to vector<8x128xf32>
    %194 = vector.extract_strided_slice %189 {offsets = [0, 0], sizes = [8, 128], strides = [1, 1]} : vector<8x384xf32> to vector<8x128xf32>
    %195 = arith.addf %193, %194 : vector<8x128xf32>
    %196 = arith.negf %195 : vector<8x128xf32>
    %197 = math.exp %196 : vector<8x128xf32>
    %cst_54 = arith.constant 1.000000e+00 : f32
    %198 = vector.broadcast %cst_54 : f32 to vector<8x128xf32>
    %199 = arith.addf %198, %197 : vector<8x128xf32>
    %200 = arith.divf %198, %199 : vector<8x128xf32>
    %201 = vector.extract_strided_slice %192 {offsets = [0, 128], sizes = [8, 128], strides = [1, 1]} : vector<8x384xf32> to vector<8x128xf32>
    %202 = vector.extract_strided_slice %189 {offsets = [0, 128], sizes = [8, 128], strides = [1, 1]} : vector<8x384xf32> to vector<8x128xf32>
    %203 = arith.addf %201, %202 : vector<8x128xf32>
    %204 = arith.negf %203 : vector<8x128xf32>
    %205 = math.exp %204 : vector<8x128xf32>
    %cst_55 = arith.constant 1.000000e+00 : f32
    %206 = vector.broadcast %cst_55 : f32 to vector<8x128xf32>
    %207 = arith.addf %206, %205 : vector<8x128xf32>
    %208 = arith.divf %206, %207 : vector<8x128xf32>
    %209 = vector.extract_strided_slice %192 {offsets = [0, 256], sizes = [8, 128], strides = [1, 1]} : vector<8x384xf32> to vector<8x128xf32>
    %210 = vector.extract_strided_slice %189 {offsets = [0, 256], sizes = [8, 128], strides = [1, 1]} : vector<8x384xf32> to vector<8x128xf32>
    %211 = arith.mulf %200, %210 : vector<8x128xf32>
    %212 = arith.addf %209, %211 : vector<8x128xf32>
    %213 = math.tanh %212 : vector<8x128xf32>
    %214 = arith.subf %180, %213 : vector<8x128xf32>
    %215 = arith.mulf %208, %214 : vector<8x128xf32>
    %216 = arith.addf %213, %215 : vector<8x128xf32>
    %217 = arith.index_cast %c5_i32 : i32 to index
    %c0_56 = arith.constant 0 : index
    %c0_57 = arith.constant 0 : index
    %218 = vector.load %arg5[%217, %c0_56, %c0_57] : memref<8x8x128xf32, #tpu.memory_space<vmem>>, vector<1x8x128xf32>
    %219 = vector.shape_cast %218 : vector<1x8x128xf32> to vector<8x128xf32>
    %220 = vector.shape_cast %216 : vector<8x128xf32> to vector<1x8x128xf32>
    tpu.vector_store %arg5[%217, %c0_56, %c0_57], %220 {strides = array<i32>} : memref<8x8x128xf32, #tpu.memory_space<vmem>>, vector<1x8x128xf32>,
    %c6_i32 = arith.constant 6 : i32
    %221 = arith.truncf %216 : vector<8x128xf32> to vector<8x128xbf16>
    %c0_58 = arith.constant 0 : index
    %c0_59 = arith.constant 0 : index
    %222 = vector.load %arg2[%c0_58, %c0_59] : memref<128x384xbf16, #tpu.memory_space<vmem>>, vector<128x384xbf16>
    %cst_60 = arith.constant dense<0.000000e+00> : vector<8x384xf32>
    %223 = tpu.matmul %221, %222, %cst_60 {dimension_numbers = #tpu.dot_dimension_numbers<[1], [0], [0], [1], [0, 0, 1, 1], [], []>} : vector<8x128xbf16>, vector<128x384xbf16>, vector<8x384xf32> -> vector<8x384xf32>
    %224 = vector.broadcast %3 : vector<1x384xf32> to vector<8x384xf32>
    %225 = arith.addf %223, %224 : vector<8x384xf32>
    %226 = arith.index_cast %c6_i32 : i32 to index
    %c0_61 = arith.constant 0 : index
    %c0_62 = arith.constant 0 : index
    %227 = vector.load %arg1[%226, %c0_61, %c0_62] : memref<8x8x384xf32, #tpu.memory_space<vmem>>, vector<1x8x384xf32>
    %228 = vector.shape_cast %227 : vector<1x8x384xf32> to vector<8x384xf32>
    %229 = vector.extract_strided_slice %228 {offsets = [0, 0], sizes = [8, 128], strides = [1, 1]} : vector<8x384xf32> to vector<8x128xf32>
    %230 = vector.extract_strided_slice %225 {offsets = [0, 0], sizes = [8, 128], strides = [1, 1]} : vector<8x384xf32> to vector<8x128xf32>
    %231 = arith.addf %229, %230 : vector<8x128xf32>
    %232 = arith.negf %231 : vector<8x128xf32>
    %233 = math.exp %232 : vector<8x128xf32>
    %cst_63 = arith.constant 1.000000e+00 : f32
    %234 = vector.broadcast %cst_63 : f32 to vector<8x128xf32>
    %235 = arith.addf %234, %233 : vector<8x128xf32>
    %236 = arith.divf %234, %235 : vector<8x128xf32>
    %237 = vector.extract_strided_slice %228 {offsets = [0, 128], sizes = [8, 128], strides = [1, 1]} : vector<8x384xf32> to vector<8x128xf32>
    %238 = vector.extract_strided_slice %225 {offsets = [0, 128], sizes = [8, 128], strides = [1, 1]} : vector<8x384xf32> to vector<8x128xf32>
    %239 = arith.addf %237, %238 : vector<8x128xf32>
    %240 = arith.negf %239 : vector<8x128xf32>
    %241 = math.exp %240 : vector<8x128xf32>
    %cst_64 = arith.constant 1.000000e+00 : f32
    %242 = vector.broadcast %cst_64 : f32 to vector<8x128xf32>
    %243 = arith.addf %242, %241 : vector<8x128xf32>
    %244 = arith.divf %242, %243 : vector<8x128xf32>
    %245 = vector.extract_strided_slice %228 {offsets = [0, 256], sizes = [8, 128], strides = [1, 1]} : vector<8x384xf32> to vector<8x128xf32>
    %246 = vector.extract_strided_slice %225 {offsets = [0, 256], sizes = [8, 128], strides = [1, 1]} : vector<8x384xf32> to vector<8x128xf32>
    %247 = arith.mulf %236, %246 : vector<8x128xf32>
    %248 = arith.addf %245, %247 : vector<8x128xf32>
    %249 = math.tanh %248 : vector<8x128xf32>
    %250 = arith.subf %216, %249 : vector<8x128xf32>
    %251 = arith.mulf %244, %250 : vector<8x128xf32>
    %252 = arith.addf %249, %251 : vector<8x128xf32>
    %253 = arith.index_cast %c6_i32 : i32 to index
    %c0_65 = arith.constant 0 : index
    %c0_66 = arith.constant 0 : index
    %254 = vector.load %arg5[%253, %c0_65, %c0_66] : memref<8x8x128xf32, #tpu.memory_space<vmem>>, vector<1x8x128xf32>
    %255 = vector.shape_cast %254 : vector<1x8x128xf32> to vector<8x128xf32>
    %256 = vector.shape_cast %252 : vector<8x128xf32> to vector<1x8x128xf32>
    tpu.vector_store %arg5[%253, %c0_65, %c0_66], %256 {strides = array<i32>} : memref<8x8x128xf32, #tpu.memory_space<vmem>>, vector<1x8x128xf32>,
    %c7_i32 = arith.constant 7 : i32
    %257 = arith.truncf %252 : vector<8x128xf32> to vector<8x128xbf16>
    %c0_67 = arith.constant 0 : index
    %c0_68 = arith.constant 0 : index
    %258 = vector.load %arg2[%c0_67, %c0_68] : memref<128x384xbf16, #tpu.memory_space<vmem>>, vector<128x384xbf16>
    %cst_69 = arith.constant dense<0.000000e+00> : vector<8x384xf32>
    %259 = tpu.matmul %257, %258, %cst_69 {dimension_numbers = #tpu.dot_dimension_numbers<[1], [0], [0], [1], [0, 0, 1, 1], [], []>} : vector<8x128xbf16>, vector<128x384xbf16>, vector<8x384xf32> -> vector<8x384xf32>
    %260 = vector.broadcast %3 : vector<1x384xf32> to vector<8x384xf32>
    %261 = arith.addf %259, %260 : vector<8x384xf32>
    %262 = arith.index_cast %c7_i32 : i32 to index
    %c0_70 = arith.constant 0 : index
    %c0_71 = arith.constant 0 : index
    %263 = vector.load %arg1[%262, %c0_70, %c0_71] : memref<8x8x384xf32, #tpu.memory_space<vmem>>, vector<1x8x384xf32>
    %264 = vector.shape_cast %263 : vector<1x8x384xf32> to vector<8x384xf32>
    %265 = vector.extract_strided_slice %264 {offsets = [0, 0], sizes = [8, 128], strides = [1, 1]} : vector<8x384xf32> to vector<8x128xf32>
    %266 = vector.extract_strided_slice %261 {offsets = [0, 0], sizes = [8, 128], strides = [1, 1]} : vector<8x384xf32> to vector<8x128xf32>
    %267 = arith.addf %265, %266 : vector<8x128xf32>
    %268 = arith.negf %267 : vector<8x128xf32>
    %269 = math.exp %268 : vector<8x128xf32>
    %cst_72 = arith.constant 1.000000e+00 : f32
    %270 = vector.broadcast %cst_72 : f32 to vector<8x128xf32>
    %271 = arith.addf %270, %269 : vector<8x128xf32>
    %272 = arith.divf %270, %271 : vector<8x128xf32>
    %273 = vector.extract_strided_slice %264 {offsets = [0, 128], sizes = [8, 128], strides = [1, 1]} : vector<8x384xf32> to vector<8x128xf32>
    %274 = vector.extract_strided_slice %261 {offsets = [0, 128], sizes = [8, 128], strides = [1, 1]} : vector<8x384xf32> to vector<8x128xf32>
    %275 = arith.addf %273, %274 : vector<8x128xf32>
    %276 = arith.negf %275 : vector<8x128xf32>
    %277 = math.exp %276 : vector<8x128xf32>
    %cst_73 = arith.constant 1.000000e+00 : f32
    %278 = vector.broadcast %cst_73 : f32 to vector<8x128xf32>
    %279 = arith.addf %278, %277 : vector<8x128xf32>
    %280 = arith.divf %278, %279 : vector<8x128xf32>
    %281 = vector.extract_strided_slice %264 {offsets = [0, 256], sizes = [8, 128], strides = [1, 1]} : vector<8x384xf32> to vector<8x128xf32>
    %282 = vector.extract_strided_slice %261 {offsets = [0, 256], sizes = [8, 128], strides = [1, 1]} : vector<8x384xf32> to vector<8x128xf32>
    %283 = arith.mulf %272, %282 : vector<8x128xf32>
    %284 = arith.addf %281, %283 : vector<8x128xf32>
    %285 = math.tanh %284 : vector<8x128xf32>
    %286 = arith.subf %252, %285 : vector<8x128xf32>
    %287 = arith.mulf %280, %286 : vector<8x128xf32>
    %288 = arith.addf %285, %287 : vector<8x128xf32>
    %289 = arith.index_cast %c7_i32 : i32 to index
    %c0_74 = arith.constant 0 : index
    %c0_75 = arith.constant 0 : index
    %290 = vector.load %arg5[%289, %c0_74, %c0_75] : memref<8x8x128xf32, #tpu.memory_space<vmem>>, vector<1x8x128xf32>
    %291 = vector.shape_cast %290 : vector<1x8x128xf32> to vector<8x128xf32>
    %292 = vector.shape_cast %288 : vector<8x128xf32> to vector<1x8x128xf32>
    tpu.vector_store %arg5[%289, %c0_74, %c0_75], %292 {strides = array<i32>} : memref<8x8x128xf32, #tpu.memory_space<vmem>>, vector<1x8x128xf32>,
    %c8_i32 = arith.constant 8 : i32
    %c0_76 = arith.constant 0 : index
    %c0_77 = arith.constant 0 : index
    %293 = vector.load %arg6[%c0_76, %c0_77] : memref<8x128xf32, #tpu.memory_space<vmem>>, vector<8x128xf32>
    tpu.vector_store %arg6[%c0_76, %c0_77], %288 {strides = array<i32>} : memref<8x128xf32, #tpu.memory_space<vmem>>, vector<8x128xf32>,
    return
  }
  func.func @transform_0(%arg0: i32) -> (i32, i32, i32) {
    %c0_i32 = arith.constant 0 : i32
    %c0_i32_0 = arith.constant 0 : i32
    %c0_i32_1 = arith.constant 0 : i32
    return %arg0, %c0_i32, %c0_i32_0 : i32, i32, i32
  }
  func.func @transform_1(%arg0: i32) -> (i32, i32) {
    %c0_i32 = arith.constant 0 : i32
    %c0_i32_0 = arith.constant 0 : i32
    %c0_i32_1 = arith.constant 0 : i32
    return %c0_i32, %c0_i32_0 : i32, i32
  }
  func.func @transform_2(%arg0: i32) -> (i32, i32) {
    %c0_i32 = arith.constant 0 : i32
    %c0_i32_0 = arith.constant 0 : i32
    %c0_i32_1 = arith.constant 0 : i32
    return %c0_i32, %c0_i32_0 : i32, i32
  }
  func.func @transform_3(%arg0: i32) -> (i32, i32) {
    %c0_i32 = arith.constant 0 : i32
    %c0_i32_0 = arith.constant 0 : i32
    %c0_i32_1 = arith.constant 0 : i32
    return %c0_i32, %c0_i32_0 : i32, i32
  }
  func.func @transform_4(%arg0: i32) -> (i32, i32, i32) {
    %c0_i32 = arith.constant 0 : i32
    %c0_i32_0 = arith.constant 0 : i32
    %c0_i32_1 = arith.constant 0 : i32
    return %arg0, %c0_i32, %c0_i32_0 : i32, i32, i32
  }
}

module attributes {stable_mosaic.version = 11 : i64} {
  func.func @linear_kernel(%arg0: i32, %arg1: i32, %arg2: memref<64x128xf32, #tpu.memory_space<vmem>>, %arg3: memref<128x128xbf16, #tpu.memory_space<vmem>>, %arg4: memref<1x128xf32, #tpu.memory_space<vmem>>, %arg5: memref<64x128xf32, #tpu.memory_space<vmem>>) attributes {dimension_semantics = [#tpu.dimension_semantics<parallel>, #tpu.dimension_semantics<parallel>], iteration_bounds = array<i64: 1, 1>, scalar_prefetch = 0 : i64, scratch_operands = 0 : i64, tpu.core_type = #tpu.core_type<tc>, window_params = [{transform_indices = @transform_0, window_bounds = array<i64: 64, 128>}, {transform_indices = @transform_1, window_bounds = array<i64: 128, 128>}, {transform_indices = @transform_2, window_bounds = array<i64: 1, 128>}, {transform_indices = @transform_3, window_bounds = array<i64: 64, 128>}]} {
    %c0 = arith.constant 0 : index
    %c0_0 = arith.constant 0 : index
    %0 = vector.load %arg2[%c0, %c0_0] : memref<64x128xf32, #tpu.memory_space<vmem>>, vector<64x128xf32>
    %1 = arith.truncf %0 : vector<64x128xf32> to vector<64x128xbf16>
    %c0_1 = arith.constant 0 : index
    %c0_2 = arith.constant 0 : index
    %2 = vector.load %arg3[%c0_1, %c0_2] : memref<128x128xbf16, #tpu.memory_space<vmem>>, vector<128x128xbf16>
    %cst = arith.constant dense<0.000000e+00> : vector<64x128xf32>
    %3 = tpu.matmul %1, %2, %cst {dimension_numbers = #tpu.dot_dimension_numbers<[1], [0], [0], [1], [0, 0, 1, 1], [], []>} : vector<64x128xbf16>, vector<128x128xbf16>, vector<64x128xf32> -> vector<64x128xf32>
    %c0_3 = arith.constant 0 : index
    %c0_4 = arith.constant 0 : index
    %4 = vector.load %arg4[%c0_3, %c0_4] : memref<1x128xf32, #tpu.memory_space<vmem>>, vector<1x128xf32>
    %5 = vector.broadcast %4 : vector<1x128xf32> to vector<64x128xf32>
    %6 = arith.addf %3, %5 : vector<64x128xf32>
    %c0_5 = arith.constant 0 : index
    %c0_6 = arith.constant 0 : index
    %7 = vector.load %arg5[%c0_5, %c0_6] : memref<64x128xf32, #tpu.memory_space<vmem>>, vector<64x128xf32>
    tpu.vector_store %arg5[%c0_5, %c0_6], %6 {strides = array<i32>} : memref<64x128xf32, #tpu.memory_space<vmem>>, vector<64x128xf32>,
    return
  }
  func.func @transform_0(%arg0: i32, %arg1: i32) -> (i32, i32) {
    %c0_i32 = arith.constant 0 : i32
    %c0_i32_0 = arith.constant 0 : i32
    return %arg1, %c0_i32 : i32, i32
  }
  func.func @transform_1(%arg0: i32, %arg1: i32) -> (i32, i32) {
    %c0_i32 = arith.constant 0 : i32
    %c0_i32_0 = arith.constant 0 : i32
    return %c0_i32, %arg0 : i32, i32
  }
  func.func @transform_2(%arg0: i32, %arg1: i32) -> (i32, i32) {
    %c0_i32 = arith.constant 0 : i32
    %c0_i32_0 = arith.constant 0 : i32
    return %c0_i32, %arg0 : i32, i32
  }
  func.func @transform_3(%arg0: i32, %arg1: i32) -> (i32, i32) {
    %c0_i32 = arith.constant 0 : i32
    return %arg1, %arg0 : i32, i32
  }
}

</mosaic_0001>

<bundles_post_ra>
// kernel: decoder_forward.9
= control target key start
LH: loop header
LB: loop body
LE: loop exit
PB: predicated region body
PF: predicated region fallthrough
CT: control target
= control target key end

     0   :  { %s339_s1 = inlined_call_operand.vmem [shape: bf16[128,128], index: 1, kind: input, shape index: {}]   ;;  %s340_s0 = inlined_call_operand.vmem [shape: f32[64,128], index: 0, kind: input, shape index: {}]   ;;  %s341_s2 = inlined_call_operand.vmem [shape: f32[1,128], index: 2, kind: input, shape index: {}]   ;;  %s342_s3 = inlined_call_operand.vmem [shape: f32[64,128], index: 3, kind: output, shape index: {}]  }
   0x1   :  { %v236_v0 = vld [vmem:[%s339_s1] sm:$0xff]   ;;  %v237_v1 = vld [vmem:[%s339_s1 + $0x8] sm:$0xff]   ;;  %v238_v2 = vld [vmem:[%s339_s1 + $0x10] sm:$0xff]  }
   0x2   :  { %196 = vmatprep.subr.bf16.mxu0 %v236_v0  ;;  %220 = vmatprep.subr.bf16.mxu1 %v236_v0  ;;  %v239_v3 = vld [vmem:[%s339_s1 + $0x18] sm:$0xff]   ;;  %v15_v4 = vld [vmem:[%s340_s0] sm:$0xff]  ;;  %v16_v5 = vld [vmem:[%s340_s0 + $0x8] sm:$0xff] }
   0x3   :  { %197 = vmatpush3.bf16.msra.mxu0 %v236_v0  ;;  %228 = vmatpush3.bf16.msra.mxu1 %v236_v0  ;;  %v19_v6 = vld [vmem:[%s340_s0 + $0x20] sm:$0xff]  ;;  %v23_v7 = vpack.c.bf16 %v16_v5, %v15_v4  ;;  %v20_v8 = vld [vmem:[%s340_s0 + $0x28] sm:$0xff]  ;;  %v242_v12 = vld [vmem:[%s339_s1 + $0x30] sm:$0xff]  }
   0x4   :  { %198 = vmatprep.subr.bf16.mxu0 %v237_v1  ;;  %221 = vmatprep.subr.bf16.mxu1 %v237_v1  ;;  %v25_v9 = vpack.c.bf16 %v20_v8, %v19_v6  ;;  %v240_v10 = vld [vmem:[%s339_s1 + $0x20] sm:$0xff]   ;;  %v241_v11 = vld [vmem:[%s339_s1 + $0x28] sm:$0xff]   ;;  %v243_v13 = vld [vmem:[%s339_s1 + $0x38] sm:$0xff]  }
   0x5   :  { %212 = vmatprep.mubr.bf16.mxu0 %v23_v7  ;;  %v17_v14 = vld [vmem:[%s340_s0 + $0x10] sm:$0xff]  ;;  %v18_v15 = vld [vmem:[%s340_s0 + $0x18] sm:$0xff]  ;;  %v175_v20 = vld [vmem:[%s341_s2] ss:$0 sm:$0xff] }
   0x6   :  { %216 = vmatprep.mubr.bf16.mxu1 %v25_v9  ;;  %v21_v16 = vld [vmem:[%s340_s0 + $0x30] sm:$0xff]  ;;  %v22_v17 = vld [vmem:[%s340_s0 + $0x38] sm:$0xff]  ;;  %v24_v18 = vpack.c.bf16 %v18_v15, %v17_v14 }
   0x7   :  { %199 = vmatpush3.bf16.msra.mxu0 %v237_v1  ;;  %229 = vmatpush3.bf16.msra.mxu1 %v237_v1  ;;  %v26_v19 = vpack.c.bf16 %v22_v17, %v21_v16 }
   0x8   :  { %200 = vmatprep.subr.bf16.mxu0 %v238_v2  ;;  %222 = vmatprep.subr.bf16.mxu1 %v238_v2 }
   0xb   :  { %201 = vmatpush3.bf16.msra.mxu0 %v238_v2  ;;  %230 = vmatpush3.bf16.msra.mxu1 %v238_v2 }
   0xc   :  { %202 = vmatprep.subr.bf16.mxu0 %v239_v3  ;;  %223 = vmatprep.subr.bf16.mxu1 %v239_v3 }
   0xf   :  { %203 = vmatpush3.bf16.msra.mxu0 %v239_v3  ;;  %231 = vmatpush3.bf16.msra.mxu1 %v239_v3 }
  0x10   :  { %204 = vmatprep.subr.bf16.mxu0 %v240_v10  ;;  %224 = vmatprep.subr.bf16.mxu1 %v240_v10 }
  0x13   :  { %205 = vmatpush3.bf16.msra.mxu0 %v240_v10  ;;  %232 = vmatpush3.bf16.msra.mxu1 %v240_v10 }
  0x14   :  { %206 = vmatprep.subr.bf16.mxu0 %v241_v11  ;;  %225 = vmatprep.subr.bf16.mxu1 %v241_v11 }
  0x17   :  { %207 = vmatpush3.bf16.msra.mxu0 %v241_v11  ;;  %233 = vmatpush3.bf16.msra.mxu1 %v241_v11 }
  0x18   :  { %208 = vmatprep.subr.bf16.mxu0 %v242_v12  ;;  %226 = vmatprep.subr.bf16.mxu1 %v242_v12 }
  0x1b   :  { %209 = vmatpush3.bf16.msra.mxu0 %v242_v12  ;;  %234 = vmatpush3.bf16.msra.mxu1 %v242_v12 }
  0x1c   :  { %210 = vmatprep.subr.bf16.mxu0 %v243_v13  ;;  %227 = vmatprep.subr.bf16.mxu1 %v243_v13 }
  0x1f   :  { %211 = vmatpush3.bf16.msra.mxu0 %v243_v13  ;;  %235 = vmatpush3.bf16.msra.mxu1 %v243_v13 }
  0x22   :  { %213 = vmatmul.mubr.bf16.vlgmr.msra.gmra.mrb[0].mxu0 %v24_v18  ;;  %217 = vmatmul.mubr.bf16.vlgmr.msra.gmra.mrb[0].mxu1 %v26_v19 }
  0xf5   :  { %v214_v21 = vpop.f32.mrb[0].mxu0  ;;  %v218_v22 = vpop.f32.mrb[0].mxu1 }
  0xf6   :  { %v141_v23 = vadd.f32 %v214_v21, %v175_v20  ;;  %v157_v24 = vadd.f32 %v218_v22, %v175_v20  ;;  %v132_v25 = vpop.f32.mrb[1].mxu0  ;;  %v148_v26 = vpop.f32.mrb[1].mxu1 }
  0xf7   :  { %v133_v27 = vadd.f32 %v175_v20, %v132_v25  ;;  %v149_v28 = vadd.f32 %v175_v20, %v148_v26  ;;  %v215_v29 = vpop.f32.mrb[2].mxu0  ;;  %v219_v30 = vpop.f32.mrb[2].mxu1 }
  0xf8   :  { %165 = vst [vmem:[%s342_s3 + $0x10] sm:$0xff] %v141_v23  ;;  %169 = vst [vmem:[%s342_s3 + $0x30] sm:$0xff] %v157_v24  ;;  %v144_v31 = vadd.f32 %v215_v29, %v175_v20  ;;  %v160_v32 = vadd.f32 %v219_v30, %v175_v20  ;;  %v135_v33 = vpop.f32.mrb[3].mxu0  ;;  %v151_v34 = vpop.f32.mrb[3].mxu1 }
  0xf9   :  { %163 = vst [vmem:[%s342_s3] sm:$0xff] %v133_v27  ;;  %167 = vst [vmem:[%s342_s3 + $0x20] sm:$0xff] %v149_v28  ;;  %v136_v35 = vadd.f32 %v175_v20, %v135_v33  ;;  %v152_v36 = vadd.f32 %v175_v20, %v151_v34 }
  0xfa   :  { %166 = vst [vmem:[%s342_s3 + $0x18] sm:$0xff] %v144_v31  ;;  %170 = vst [vmem:[%s342_s3 + $0x38] sm:$0xff] %v160_v32 }
  0xfb   :  { %164 = vst [vmem:[%s342_s3 + $0x8] sm:$0xff] %v136_v35  ;;  %168 = vst [vmem:[%s342_s3 + $0x28] sm:$0xff] %v152_v36 }

// kernel: decoder_forward.5
= control target key start
LH: loop header
LB: loop body
LE: loop exit
PB: predicated region body
PF: predicated region fallthrough
CT: control target
= control target key end

     0   :  { %v463_v1 = vmov 0   ;;  %v61_v37 = vlaneseq  ;;  %s679_s1 = inlined_call_operand.vmem [shape: bf16[128,384], index: 1, kind: input, shape index: {}]   ;;  %s680_s0 = inlined_call_operand.vmem [shape: f32[64,128], index: 0, kind: input, shape index: {}]   ;;  %s681_s2 = inlined_call_operand.vmem [shape: f32[1,384], index: 2, kind: input, shape index: {}]   ;;  %s682_s3 = inlined_call_operand.vmem [shape: f32[64,384], index: 3, kind: output, shape index: {}]  }
   0x1   :  { %v431_v0 = vld [vmem:[%s679_s1 + $0x4] ss:$12 sps:$4 sm:$0xff]   ;;  %236 = vmatprep.mubr.bf16.mxu0 %v463_v1  ;;  %v433_v2 = vld [vmem:[%s679_s1] ss:$12 sps:$4 sm:$0xff]   ;;  %v434_v3 = vld [vmem:[%s679_s1 + $0x1c] ss:$12 sps:$4 sm:$0xff]  }
   0x2   :  { %204 = vmatprep.subr.bf16.mxu0 %v431_v0  ;;  %v436_v4 = vld [vmem:[%s679_s1 + $0x18] ss:$12 sps:$4 sm:$0xff]   ;;  %v437_v5 = vld [vmem:[%s679_s1 + $0x34] ss:$12 sps:$4 sm:$0xff]   ;;  %v439_v7 = vld [vmem:[%s679_s1 + $0x30] ss:$12 sps:$4 sm:$0xff]  }
   0x3   :  { %205 = vmatpush1.bf16.msra.mxu0 %v433_v2  ;;  %v443_v6 = vld [vmem:[%s679_s1 + $0x8] ss:$12 sps:$4 sm:$0xff]   ;;  %v440_v8 = vld [vmem:[%s679_s1 + $0x4c] ss:$12 sps:$4 sm:$0xff]   ;;  %v444_v12 = vld [vmem:[%s679_s1 + $0x64] ss:$12 sps:$4 sm:$0xff]  }
   0x4   :  { %206 = vmatprep.subr.bf16.mxu0 %v434_v3  ;;  %406 = vmatprep.subr.bf16.mxu1 %v443_v6  ;;  %v447_v9 = vld [vmem:[%s679_s1 + $0x20] ss:$12 sps:$4 sm:$0xff]   ;;  %v451_v10 = vld [vmem:[%s679_s1 + $0x38] ss:$12 sps:$4 sm:$0xff]   ;;  %v442_v11 = vld [vmem:[%s679_s1 + $0x48] ss:$12 sps:$4 sm:$0xff]  }
   0x5   :  { %407 = vmatpush3.bf16.msra.mxu1 %v443_v6  ;;  %v446_v13 = vld [vmem:[%s679_s1 + $0x60] ss:$12 sps:$4 sm:$0xff]   ;;  %v455_v14 = vld [vmem:[%s679_s1 + $0x50] ss:$12 sps:$4 sm:$0xff]   ;;  %v459_v19 = vld [vmem:[%s679_s1 + $0x68] ss:$12 sps:$4 sm:$0xff]  }
   0x6   :  { %408 = vmatprep.subr.bf16.mxu1 %v447_v9  ;;  %v448_v15 = vld [vmem:[%s679_s1 + $0x7c] ss:$12 sps:$4 sm:$0xff]   ;;  %v15_v16 = vld [vmem:[%s680_s0] sm:$0xff]  ;;  %v456_v24 = vld [vmem:[%s679_s1 + $0xac] ss:$12 sps:$4 sm:$0xff]   ;;  %v62_v38 = vshrl.u32 %v61_v37, 7 }
   0x7   :  { %207 = vmatpush1.bf16.msra.mxu0 %v436_v4  ;;  %v16_v17 = vld [vmem:[%s680_s0 + $0x8] sm:$0xff]  ;;  %v450_v20 = vld [vmem:[%s679_s1 + $0x78] ss:$12 sps:$4 sm:$0xff]   ;;  %v452_v21 = vld [vmem:[%s679_s1 + $0x94] ss:$12 sps:$4 sm:$0xff]  }
   0x8   :  { %208 = vmatprep.subr.bf16.mxu0 %v437_v5  ;;  %v23_v18 = vpack.c.bf16 %v16_v17, %v15_v16  ;;  %v460_v22 = vld [vmem:[%s679_s1 + $0x80] ss:$12 sps:$4 sm:$0xff]   ;;  %v454_v23 = vld [vmem:[%s679_s1 + $0x90] ss:$12 sps:$4 sm:$0xff]   ;;  %v461_v25 = vld [vmem:[%s679_s1 + $0x98] ss:$12 sps:$4 sm:$0xff]  }
   0x9   :  { %409 = vmatpush3.bf16.msra.mxu1 %v447_v9  ;;  %v458_v26 = vld [vmem:[%s679_s1 + $0xa8] ss:$12 sps:$4 sm:$0xff]   ;;  %v462_v27 = vld [vmem:[%s679_s1 + $0xb0] ss:$12 sps:$4 sm:$0xff]   ;;  %v19_v30 = vld [vmem:[%s680_s0 + $0x20] sm:$0xff]  ;;  %v63_v39 = vsub.s32 0, %v62_v38 }
   0xa   :  { %410 = vmatprep.subr.bf16.mxu1 %v451_v10  ;;  %422 = vmatprep.mubr.bf16.mxu1 %v23_v18  ;;  %v17_v28 = vld [vmem:[%s680_s0 + $0x10] sm:$0xff]  ;;  %v18_v29 = vld [vmem:[%s680_s0 + $0x18] sm:$0xff]  ;;  %v20_v31 = vld [vmem:[%s680_s0 + $0x28] sm:$0xff]  ;;  %v67_v41 = vsub.s32 1, %v62_v38  ;;  %v71_v44 = vsub.s32 2, %v62_v38 }
   0xb   :  { %209 = vmatpush1.bf16.msra.mxu0 %v439_v7  ;;  %v24_v32 = vpack.c.bf16 %v18_v29, %v17_v28  ;;  %v25_v33 = vpack.c.bf16 %v20_v31, %v19_v30  ;;  %v21_v34 = vld [vmem:[%s680_s0 + $0x30] sm:$0xff]  ;;  %v22_v35 = vld [vmem:[%s680_s0 + $0x38] sm:$0xff]  ;;  %v59_v40 = vld [vmem:[%s681_s2] sm:$0x7] }
   0xc   :  { %210 = vmatprep.subr.bf16.mxu0 %v440_v8  ;;  %v26_v36 = vpack.c.bf16 %v22_v35, %v21_v34  ;;  %v587_v42 = vrot.slane %v59_v40, %v63_v39  ;;  %v589_v43 = vrot.slane %v59_v40, %v67_v41  ;;  %v72_v52 = vrot.slane %v59_v40, %v71_v44 }
   0xd   :  { %411 = vmatpush3.bf16.msra.mxu1 %v451_v10 }
   0xe   :  { %412 = vmatprep.subr.bf16.mxu1 %v455_v14 }
   0xf   :  { %211 = vmatpush1.bf16.msra.mxu0 %v442_v11 }
  0x10   :  { %212 = vmatprep.subr.bf16.mxu0 %v444_v12 }
  0x11   :  { %413 = vmatpush3.bf16.msra.mxu1 %v455_v14 }
  0x12   :  { %414 = vmatprep.subr.bf16.mxu1 %v459_v19 }
  0x13   :  { %213 = vmatpush1.bf16.msra.mxu0 %v446_v13 }
  0x14   :  { %214 = vmatprep.subr.bf16.mxu0 %v448_v15 }
  0x15   :  { %415 = vmatpush3.bf16.msra.mxu1 %v459_v19 }
  0x16   :  { %416 = vmatprep.subr.bf16.mxu1 %v460_v22 }
  0x17   :  { %215 = vmatpush1.bf16.msra.mxu0 %v450_v20 }
  0x18   :  { %216 = vmatprep.subr.bf16.mxu0 %v452_v21 }
  0x19   :  { %417 = vmatpush3.bf16.msra.mxu1 %v460_v22 }
  0x1a   :  { %418 = vmatprep.subr.bf16.mxu1 %v461_v25 }
  0x1b   :  { %217 = vmatpush1.bf16.msra.mxu0 %v454_v23 }
  0x1c   :  { %218 = vmatprep.subr.bf16.mxu0 %v456_v24 }
  0x1d   :  { %419 = vmatpush3.bf16.msra.mxu1 %v461_v25 }
  0x1e   :  { %420 = vmatprep.subr.bf16.mxu1 %v462_v27 }
  0x1f   :  { %219 = vmatpush1.bf16.msra.mxu0 %v458_v26 }
  0x21   :  { %421 = vmatpush3.bf16.msra.mxu1 %v462_v27 }
  0x22   :  { %237 = vmatmul.mubr.bf16.vlgmr.msra.gmra.mrb[0].mxu0 %v23_v18 }
  0x23   :  { %246 = vmatprep.mubr.bf16.mxu0 %v463_v1 }
  0x24   :  { %423 = vmatmul.mubr.bf16.vlgmr.msra.gmra.mrb[0].mxu1 %v24_v32 }
  0x25   :  { %426 = vmatprep.mubr.bf16.mxu1 %v25_v33 }
  0x2a   :  { %247 = vmatmul.mubr.bf16.gmra.mrb[4].mxu0 %v24_v32 }
  0x2b   :  { %256 = vmatprep.mubr.bf16.mxu0 %v463_v1 }
  0x2c   :  { %427 = vmatmul.mubr.bf16.gmra.mrb[4].mxu1 %v26_v36 }
  0x32   :  { %257 = vmatmul.mubr.bf16.gmra.mrb[8].mxu0 %v25_v33 }
  0x33   :  { %266 = vmatprep.mubr.bf16.mxu0 %v463_v1 }
  0x3a   :  { %267 = vmatmul.mubr.bf16.gmra.mrb[12].mxu0 %v26_v36 }
  0xf5   :  { %v238_v45 = vpop.f32.mrb[0].mxu0 }
  0xf6   :  { %v239_v46 = vadd.f32 %v238_v45, %v587_v42  ;;  %v240_v47 = vpop.f32.mrb[1].mxu0 }
  0xf7   :  { %v241_v48 = vadd.f32 %v240_v47, %v589_v43  ;;  %v242_v49 = vpop.f32.mrb[2].mxu0  ;;  %v424_v54 = vpop.f32.mrb[0].mxu1 }
  0xf8   :  { %342 = vst [vmem:[%s682_s3] sm:$0xff] %v239_v46  ;;  %v243_v50 = vadd.f32 %v242_v49, %v587_v42  ;;  %v244_v51 = vpop.f32.mrb[3].mxu0  ;;  %v320_v55 = vadd.f32 %v424_v54, %v72_v52  ;;  %v311_v56 = vpop.f32.mrb[1].mxu1 }
  0xf9   :  { %343 = vst [vmem:[%s682_s3 + $0x8] sm:$0xff] %v241_v48  ;;  %v245_v53 = vadd.f32 %v244_v51, %v589_v43  ;;  %v312_v58 = vadd.f32 %v311_v56, %v72_v52  ;;  %v425_v59 = vpop.f32.mrb[2].mxu1 }
  0xfa   :  { %345 = vst [vmem:[%s682_s3 + $0x18] sm:$0xff] %v243_v50  ;;  %350 = vst [vmem:[%s682_s3 + $0x40] sm:$0xff] %v320_v55  ;;  %v323_v62 = vadd.f32 %v425_v59, %v72_v52  ;;  %v314_v63 = vpop.f32.mrb[3].mxu1 }
  0xfb   :  { %346 = vst [vmem:[%s682_s3 + $0x20] sm:$0xff] %v245_v53  ;;  %344 = vst [vmem:[%s682_s3 + $0x10] sm:$0xff] %v312_v58  ;;  %v315_v2 = vadd.f32 %v314_v63, %v72_v52 }
  0xfc   :  { %353 = vst [vmem:[%s682_s3 + $0x58] sm:$0xff] %v323_v62 }
  0xfd   :  { %v248_v57 = vpop.f32.mrb[4].mxu0  ;;  %347 = vst [vmem:[%s682_s3 + $0x28] sm:$0xff] %v315_v2 }
  0xfe   :  { %v249_v60 = vadd.f32 %v248_v57, %v587_v42  ;;  %v250_v61 = vpop.f32.mrb[5].mxu0 }
  0xff   :  { %v251_v0 = vadd.f32 %v250_v61, %v589_v43  ;;  %v252_v1 = vpop.f32.mrb[6].mxu0  ;;  %v428_v6 = vpop.f32.mrb[4].mxu1 }
 0x100   :  { %348 = vst [vmem:[%s682_s3 + $0x30] sm:$0xff] %v249_v60  ;;  %v253_v3 = vadd.f32 %v252_v1, %v587_v42  ;;  %v254_v4 = vpop.f32.mrb[7].mxu0  ;;  %v336_v7 = vadd.f32 %v428_v6, %v72_v52  ;;  %v327_v8 = vpop.f32.mrb[5].mxu1 }
 0x101   :  { %349 = vst [vmem:[%s682_s3 + $0x38] sm:$0xff] %v251_v0  ;;  %v255_v5 = vadd.f32 %v254_v4, %v589_v43  ;;  %v328_v10 = vadd.f32 %v327_v8, %v72_v52  ;;  %v429_v11 = vpop.f32.mrb[6].mxu1 }
 0x102   :  { %351 = vst [vmem:[%s682_s3 + $0x48] sm:$0xff] %v253_v3  ;;  %362 = vst [vmem:[%s682_s3 + $0xa0] sm:$0xff] %v336_v7  ;;  %v339_v14 = vadd.f32 %v429_v11, %v72_v52  ;;  %v330_v15 = vpop.f32.mrb[7].mxu1 }
 0x103   :  { %352 = vst [vmem:[%s682_s3 + $0x50] sm:$0xff] %v255_v5  ;;  %356 = vst [vmem:[%s682_s3 + $0x70] sm:$0xff] %v328_v10  ;;  %v331_v18 = vadd.f32 %v330_v15, %v72_v52 }
 0x104   :  { %365 = vst [vmem:[%s682_s3 + $0xb8] sm:$0xff] %v339_v14 }
 0x105   :  { %v258_v9 = vpop.f32.mrb[8].mxu0  ;;  %359 = vst [vmem:[%s682_s3 + $0x88] sm:$0xff] %v331_v18 }
 0x106   :  { %v259_v12 = vadd.f32 %v258_v9, %v587_v42  ;;  %v260_v13 = vpop.f32.mrb[9].mxu0 }
 0x107   :  { %v261_v16 = vadd.f32 %v260_v13, %v589_v43  ;;  %v262_v17 = vpop.f32.mrb[10].mxu0 }
 0x108   :  { %354 = vst [vmem:[%s682_s3 + $0x60] sm:$0xff] %v259_v12  ;;  %v263_v19 = vadd.f32 %v262_v17, %v587_v42  ;;  %v264_v20 = vpop.f32.mrb[11].mxu0 }
 0x109   :  { %355 = vst [vmem:[%s682_s3 + $0x68] sm:$0xff] %v261_v16  ;;  %v265_v21 = vadd.f32 %v264_v20, %v589_v43 }
 0x10a   :  { %357 = vst [vmem:[%s682_s3 + $0x78] sm:$0xff] %v263_v19 }
 0x10b   :  { %358 = vst [vmem:[%s682_s3 + $0x80] sm:$0xff] %v265_v21 }
 0x10d   :  { %v268_v22 = vpop.f32.mrb[12].mxu0 }
 0x10e   :  { %v269_v23 = vadd.f32 %v268_v22, %v587_v42  ;;  %v270_v24 = vpop.f32.mrb[13].mxu0 }
 0x10f   :  { %v271_v25 = vadd.f32 %v270_v24, %v589_v43  ;;  %v272_v26 = vpop.f32.mrb[14].mxu0 }
 0x110   :  { %360 = vst [vmem:[%s682_s3 + $0x90] sm:$0xff] %v269_v23  ;;  %v273_v27 = vadd.f32 %v272_v26, %v587_v42  ;;  %v274_v28 = vpop.f32.mrb[15].mxu0 }
 0x111   :  { %361 = vst [vmem:[%s682_s3 + $0x98] sm:$0xff] %v271_v25  ;;  %v275_v29 = vadd.f32 %v274_v28, %v589_v43 }
 0x112   :  { %363 = vst [vmem:[%s682_s3 + $0xa8] sm:$0xff] %v273_v27 }
 0x113   :  { %364 = vst [vmem:[%s682_s3 + $0xb0] sm:$0xff] %v275_v29 }

// kernel: decoder_forward.6
= control target key start
LH: loop header
LB: loop body
LE: loop exit
PB: predicated region body
PF: predicated region fallthrough
CT: control target
= control target key end

     0   :  { %v2852_v1 = vmov 0.0   ;;  %v2853_v2 = vmov 0   ;;  %vm2854_vm0 = vmmov 0   ;;  %v60_v36 = vlaneseq  ;;  %s3621_s1 = inlined_call_operand.vmem [shape: bf16[128,384], index: 1, kind: input, shape index: {}]   ;;  %s3622_s3 = inlined_call_operand.vmem [shape: f32[8,128], index: 3, kind: input, shape index: {}]   ;;  %s3623_s2 = inlined_call_operand.vmem [shape: f32[1,384], index: 2, kind: input, shape index: {}]   ;;  %s3624_s0 = inlined_call_operand.vmem [shape: f32[8,8,384], index: 0, kind: input, shape index: {}]   ;;  %s3625_s4 = inlined_call_operand.vmem [shape: f32[8,8,128], index: 4, kind: output, shape index: {}]  }
   0x1   :  { %v2883_v0 = vld [vmem:[%s3621_s1 + $0x4] ss:$12 sps:$4 sm:$0xff]   ;;  %2497 = vmatprep.subr.bf16.mxu1 %v2852_v1  ;;  %235 = vmatprep.mubr.bf16.mxu0 %v2853_v2  ;;  %v2890_v3 = vld [vmem:[%s3621_s1] ss:$12 sps:$4 sm:$0xff]   ;;  %v2898_v4 = vld [vmem:[%s3621_s1 + $0x1c] ss:$12 sps:$4 sm:$0xff]  }
   0x2   :  { %2513 = vmatprep.mubr.msk.bf16.mxu1 %vm2854_vm0, %v2852_v1  ;;  %203 = vmatprep.subr.bf16.mxu0 %v2883_v0  ;;  %v2904_v5 = vld [vmem:[%s3621_s1 + $0x18] ss:$12 sps:$4 sm:$0xff]   ;;  %v2910_v6 = vld [vmem:[%s3621_s1 + $0x34] ss:$12 sps:$4 sm:$0xff]   ;;  %v2916_v7 = vld [vmem:[%s3621_s1 + $0x30] ss:$12 sps:$4 sm:$0xff]  }
   0x3   :  { %204 = vmatpush1.bf16.msra.mxu0 %v2890_v3  ;;  %v2922_v8 = vld [vmem:[%s3621_s1 + $0x4c] ss:$12 sps:$4 sm:$0xff]   ;;  %v2681_v9 = vld [vmem:[%s3621_s1 + $0x8] ss:$12 sps:$4 sm:$0xff]   ;;  %v2937_v11 = vld [vmem:[%s3621_s1 + $0x64] ss:$12 sps:$4 sm:$0xff]  }
   0x4   :  { %205 = vmatprep.subr.bf16.mxu0 %v2898_v4  ;;  %v2931_v10 = vld [vmem:[%s3621_s1 + $0x48] ss:$12 sps:$4 sm:$0xff]   ;;  %2498 = vmatpush3.bf16.msra.mxu1 %v2681_v9  ;;  %v2685_v12 = vld [vmem:[%s3621_s1 + $0x20] ss:$12 sps:$4 sm:$0xff]   ;;  %v2686_v15 = vld [vmem:[%s3621_s1 + $0x38] ss:$12 sps:$4 sm:$0xff]  }
   0x5   :  { %2499 = vmatprep.subr.bf16.mxu1 %v2852_v1  ;;  %v2946_v13 = vld [vmem:[%s3621_s1 + $0x60] ss:$12 sps:$4 sm:$0xff]   ;;  %v2952_v14 = vld [vmem:[%s3621_s1 + $0x7c] ss:$12 sps:$4 sm:$0xff]   ;;  %v2961_v16 = vld [vmem:[%s3621_s1 + $0x78] ss:$12 sps:$4 sm:$0xff]  }
   0x6   :  { %v2967_v17 = vld [vmem:[%s3621_s1 + $0x94] ss:$12 sps:$4 sm:$0xff]   ;;  %v2687_v18 = vld [vmem:[%s3621_s1 + $0x50] ss:$12 sps:$4 sm:$0xff]   ;;  %v2983_v20 = vld [vmem:[%s3621_s1 + $0xac] ss:$12 sps:$4 sm:$0xff]  }
   0x7   :  { %206 = vmatpush1.bf16.msra.mxu0 %v2904_v5  ;;  %v2977_v19 = vld [vmem:[%s3621_s1 + $0x90] ss:$12 sps:$4 sm:$0xff]   ;;  %v2688_v21 = vld [vmem:[%s3621_s1 + $0x68] ss:$12 sps:$4 sm:$0xff]   ;;  %v2998_v23 = vld [vmem:[%s3622_s3] sm:$0xff]  ;;  %v61_v37 = vshrl.u32 %v60_v36, 7 }
   0x8   :  { %207 = vmatprep.subr.bf16.mxu0 %v2910_v6  ;;  %2500 = vmatpush3.bf16.msra.mxu1 %v2685_v12  ;;  %v2993_v22 = vld [vmem:[%s3621_s1 + $0xa8] ss:$12 sps:$4 sm:$0xff]   ;;  %v2689_v24 = vld [vmem:[%s3621_s1 + $0x80] ss:$12 sps:$4 sm:$0xff]   ;;  %v26_v25 = vpack.c.bf16 %v2998_v23, %v2998_v23  ;;  %v2690_v26 = vld [vmem:[%s3621_s1 + $0x98] ss:$12 sps:$4 sm:$0xff]  }
   0x9   :  { %2501 = vmatprep.subr.bf16.mxu1 %v2852_v1  ;;  %v2691_v27 = vld [vmem:[%s3621_s1 + $0xb0] ss:$12 sps:$4 sm:$0xff]   ;;  %v2692_v28 = vld [vmem:[%s3621_s1 + $0x8] ss:$12 sps:$4 sm:$0xff]   ;;  %v2693_v29 = vld [vmem:[%s3621_s1 + $0x20] ss:$12 sps:$4 sm:$0xff]  }
   0xa   :  { %v2694_v30 = vld [vmem:[%s3621_s1 + $0x38] ss:$12 sps:$4 sm:$0xff]   ;;  %v2695_v31 = vld [vmem:[%s3621_s1 + $0x50] ss:$12 sps:$4 sm:$0xff]   ;;  %v2696_v32 = vld [vmem:[%s3621_s1 + $0x68] ss:$12 sps:$4 sm:$0xff]  }
   0xb   :  { %208 = vmatpush1.bf16.msra.mxu0 %v2916_v7  ;;  %v2697_v33 = vld [vmem:[%s3621_s1 + $0x80] ss:$12 sps:$4 sm:$0xff]   ;;  %v2698_v34 = vld [vmem:[%s3621_s1 + $0x98] ss:$12 sps:$4 sm:$0xff]   ;;  %v2699_v35 = vld [vmem:[%s3621_s1 + $0xb0] ss:$12 sps:$4 sm:$0xff]  }
   0xc   :  { %209 = vmatprep.subr.bf16.mxu0 %v2922_v8  ;;  %2502 = vmatpush3.bf16.msra.mxu1 %v2686_v15  ;;  %v62_v38 = vsub.s32 0, %v61_v37  ;;  %v24_v39 = vld [vmem:[%s3623_s2] sm:$0x7]  ;;  %v66_v41 = vsub.s32 1, %v61_v37  ;;  %v285_v52 = vld [vmem:[%s3624_s0 + $0x8] sm:$0xff]  ;;  %v70_v61 = vsub.s32 2, %v61_v37 }
   0xd   :  { %2503 = vmatprep.subr.bf16.mxu1 %v2852_v1  ;;  %v284_v43 = vld [vmem:[%s3624_s0] sm:$0xff]  ;;  %v286_v15 = vld [vmem:[%s3624_s0 + $0x10] sm:$0xff] }
   0xe   :  { %v3074_v40 = vrot.slane %v24_v39, %v62_v38  ;;  %v3080_v48 = vrot.slane %v24_v39, %v66_v41  ;;  %v3086_v62 = vrot.slane %v24_v39, %v70_v61  ;;  %v2706_v36 = vld [vmem:[%s3621_s1 + $0x98] ss:$12 sps:$4 sm:$0xff]   ;;  %v2707_v37 = vld [vmem:[%s3621_s1 + $0xb0] ss:$12 sps:$4 sm:$0xff]   ;;  %v2241_v61 = vld [vmem:[%s3624_s0 + $0x28] sm:$0xff] }
   0xf   :  { %210 = vmatpush1.bf16.msra.mxu0 %v2931_v10  ;;  %v2239_v39 = vld [vmem:[%s3624_s0 + $0x18] sm:$0xff] }
  0x10   :  { %211 = vmatprep.subr.bf16.mxu0 %v2937_v11  ;;  %2504 = vmatpush3.bf16.msra.mxu1 %v2687_v18 }
  0x11   :  { %2505 = vmatprep.subr.bf16.mxu1 %v2852_v1 }
  0x13   :  { %212 = vmatpush1.bf16.msra.mxu0 %v2946_v13 }
  0x14   :  { %213 = vmatprep.subr.bf16.mxu0 %v2952_v14  ;;  %2506 = vmatpush3.bf16.msra.mxu1 %v2688_v21 }
  0x15   :  { %2507 = vmatprep.subr.bf16.mxu1 %v2852_v1 }
  0x17   :  { %214 = vmatpush1.bf16.msra.mxu0 %v2961_v16 }
  0x18   :  { %215 = vmatprep.subr.bf16.mxu0 %v2967_v17  ;;  %2508 = vmatpush3.bf16.msra.mxu1 %v2689_v24 }
  0x19   :  { %2509 = vmatprep.subr.bf16.mxu1 %v2852_v1 }
  0x1b   :  { %216 = vmatpush1.bf16.msra.mxu0 %v2977_v19 }
  0x1c   :  { %217 = vmatprep.subr.bf16.mxu0 %v2983_v20  ;;  %2510 = vmatpush3.bf16.msra.mxu1 %v2690_v26 }
  0x1d   :  { %2511 = vmatprep.subr.bf16.mxu1 %v2852_v1 }
  0x1f   :  { %218 = vmatpush1.bf16.msra.mxu0 %v2993_v22 }
  0x20   :  { %469 = vmatprep.subr.bf16.mxu0 %v2883_v0  ;;  %2512 = vmatpush3.bf16.msra.mxu1 %v2691_v27 }
  0x21   :  { %2517 = vmatprep.subr.bf16.mxu1 %v2852_v1 }
  0x22   :  { %236 = vmatmul.mubr.bf16.vlgmr.msra.gmra.mrb[0].mxu0 %v26_v25 }
  0x23   :  { %470 = vmatpush1.bf16.msra.mxu0 %v2890_v3  ;;  %501 = vmatprep.mubr.bf16.mxu0 %v2853_v2 }
  0x24   :  { %471 = vmatprep.subr.bf16.mxu0 %v2898_v4  ;;  %2514 = vmatmul.mubr.bf16.vlgmr.msra.gmra.mrb[0].mxu1 %v26_v25 }
  0x25   :  { %2533 = vmatprep.mubr.msk.bf16.mxu1 %vm2854_vm0, %v2852_v1  ;;  %2518 = vmatpush3.bf16.msra.mxu1 %v2692_v28 }
  0x26   :  { %2519 = vmatprep.subr.bf16.mxu1 %v2852_v1 }
  0x27   :  { %472 = vmatpush1.bf16.msra.mxu0 %v2904_v5 }
  0x28   :  { %473 = vmatprep.subr.bf16.mxu0 %v2910_v6 }
  0x29   :  { %2520 = vmatpush3.bf16.msra.mxu1 %v2693_v29 }
  0x2a   :  { %2521 = vmatprep.subr.bf16.mxu1 %v2852_v1 }
  0x2b   :  { %474 = vmatpush1.bf16.msra.mxu0 %v2916_v7 }
  0x2c   :  { %475 = vmatprep.subr.bf16.mxu0 %v2922_v8 }
  0x2d   :  { %2522 = vmatpush3.bf16.msra.mxu1 %v2694_v30 }
  0x2e   :  { %2523 = vmatprep.subr.bf16.mxu1 %v2852_v1 }
  0x2f   :  { %476 = vmatpush1.bf16.msra.mxu0 %v2931_v10 }
  0x30   :  { %477 = vmatprep.subr.bf16.mxu0 %v2937_v11 }
  0x31   :  { %2524 = vmatpush3.bf16.msra.mxu1 %v2695_v31  ;;  %v2701_v31 = vld [vmem:[%s3621_s1 + $0x20] ss:$12 sps:$4 sm:$0xff]  }
  0x32   :  { %2525 = vmatprep.subr.bf16.mxu1 %v2852_v1 }
  0x33   :  { %478 = vmatpush1.bf16.msra.mxu0 %v2946_v13 }
  0x34   :  { %479 = vmatprep.subr.bf16.mxu0 %v2952_v14 }
  0x35   :  { %2526 = vmatpush3.bf16.msra.mxu1 %v2696_v32  ;;  %v2702_v32 = vld [vmem:[%s3621_s1 + $0x38] ss:$12 sps:$4 sm:$0xff]  }
  0x36   :  { %2527 = vmatprep.subr.bf16.mxu1 %v2852_v1 }
  0x37   :  { %480 = vmatpush1.bf16.msra.mxu0 %v2961_v16 }
  0x38   :  { %481 = vmatprep.subr.bf16.mxu0 %v2967_v17 }
  0x39   :  { %2528 = vmatpush3.bf16.msra.mxu1 %v2697_v33  ;;  %v2703_v33 = vld [vmem:[%s3621_s1 + $0x50] ss:$12 sps:$4 sm:$0xff]  }
  0x3a   :  { %2529 = vmatprep.subr.bf16.mxu1 %v2852_v1 }
  0x3b   :  { %482 = vmatpush1.bf16.msra.mxu0 %v2977_v19 }
  0x3c   :  { %483 = vmatprep.subr.bf16.mxu0 %v2983_v20 }
  0x3d   :  { %2530 = vmatpush3.bf16.msra.mxu1 %v2698_v34  ;;  %v2704_v34 = vld [vmem:[%s3621_s1 + $0x68] ss:$12 sps:$4 sm:$0xff]  }
  0x3e   :  { %2531 = vmatprep.subr.bf16.mxu1 %v2852_v1 }
  0x3f   :  { %484 = vmatpush1.bf16.msra.mxu0 %v2993_v22 }
  0x40   :  { %737 = vmatprep.subr.bf16.mxu0 %v2883_v0 }
  0x41   :  { %2532 = vmatpush3.bf16.msra.mxu1 %v2699_v35  ;;  %v2705_v35 = vld [vmem:[%s3621_s1 + $0x80] ss:$12 sps:$4 sm:$0xff]  }
  0x42   :  { %2537 = vmatprep.subr.bf16.mxu1 %v2852_v1 }
  0xf5   :  { %v237_v42 = vpop.f32.mrb[0].mxu0 }
  0xf6   :  { %v238_v44 = vadd.f32 %v237_v42, %v3074_v40  ;;  %v239_v45 = vpop.f32.mrb[1].mxu0 }
  0xf7   :  { %v241_v46 = vpop.f32.mrb[2].mxu0  ;;  %v240_v51 = vadd.f32 %v239_v45, %v3080_v48  ;;  %v278_v53 = vpop.f32.mrb[0].mxu1 }
  0xf8   :  { %v287_v47 = vadd.f32 %v284_v43, %v238_v44  ;;  %v242_v49 = vpop.f32.mrb[3].mxu0  ;;  %v2515_v54 = vpop.f32.mrb[1].mxu1  ;;  %v279_v63 = vadd.f32 %v278_v53, %v3086_v62  ;;  %v2240_v53 = vld [vmem:[%s3624_s0 + $0x20] sm:$0xff] }
  0xf9   :  { %v294_v55 = vadd.f32 %v285_v52, %v240_v51  ;;  %v281_v56 = vpop.f32.mrb[2].mxu1 }
  0xfa   :  { %v2213_v50 = vmul.f32 -1.442695, %v287_v47  ;;  %v2516_v57 = vpop.f32.mrb[3].mxu1 }
  0xfb   :  { %v2214_v58 = vmul.f32 -1.442695, %v294_v55 }
  0xfc   :  { %2772 = vpow2.f32 %v2213_v50 }
  0xfd   :  { %2774 = vpow2.f32 %v2214_v58 }
 0x106   :  { %v2773_v59 = vpop.eup %2772 }
 0x107   :  { %v291_v60 = vadd.f32 1.0, %v2773_v59  ;;  %v2775_v9 = vpop.eup %2774 }
 0x108   :  { %v298_v21 = vadd.f32 1.0, %v2775_v9 }
 0x109   :  { %2776 = vrcp.f32 %v291_v60 }
 0x113   :  { %v2777_v12 = vpop.eup %2776 }
 0x114   :  { %v301_v18 = vmul.f32 %v2777_v12, %v279_v63 }
 0x116   :  { %v302_v24 = vadd.f32 %v301_v18, %v286_v15 }
 0x118   :  { %2778 = vtanh.f32 %v302_v24 }
 0x119   :  { %2780 = vrcp.f32 %v298_v21 }
 0x122   :  { %v2779_v25 = vpop.eup %2778 }
 0x123   :  { %v304_v26 = vsub.f32 %v2998_v23, %v2779_v25  ;;  %v2781_v27 = vpop.eup %2780  ;;  %v2700_v23 = vld [vmem:[%s3621_s1 + $0x8] ss:$12 sps:$4 sm:$0xff]  }
 0x125   :  { %v305_v28 = vmul.f32 %v2781_v27, %v304_v26 }
 0x127   :  { %v3093_v29 = vadd.f32 %v2779_v25, %v305_v28 }
 0x129   :  { %307 = vst [vmem:[%s3625_s4] sm:$0xff] %v3093_v29  ;;  %v308_v30 = vpack.c.bf16 %v3093_v29, %v3093_v29 }
 0x12b   :  { %502 = vmatmul.mubr.bf16.vlgmr.msra.gmra.mrb[4].mxu0 %v308_v30  ;;  %2534 = vmatmul.mubr.bf16.vlgmr.msra.gmra.mrb[4].mxu1 %v308_v30 }
 0x12c   :  { %738 = vmatpush1.bf16.msra.mxu0 %v2890_v3  ;;  %769 = vmatprep.mubr.bf16.mxu0 %v2853_v2 }
 0x12d   :  { %739 = vmatprep.subr.bf16.mxu0 %v2898_v4  ;;  %2553 = vmatprep.mubr.msk.bf16.mxu1 %vm2854_vm0, %v2852_v1 }
 0x12e   :  { %2538 = vmatpush3.bf16.msra.mxu1 %v2700_v23 }
 0x12f   :  { %2539 = vmatprep.subr.bf16.mxu1 %v2852_v1 }
 0x130   :  { %740 = vmatpush1.bf16.msra.mxu0 %v2904_v5 }
 0x131   :  { %741 = vmatprep.subr.bf16.mxu0 %v2910_v6 }
 0x132   :  { %2540 = vmatpush3.bf16.msra.mxu1 %v2701_v31 }
 0x133   :  { %2541 = vmatprep.subr.bf16.mxu1 %v2852_v1 }
 0x134   :  { %742 = vmatpush1.bf16.msra.mxu0 %v2916_v7 }
 0x135   :  { %743 = vmatprep.subr.bf16.mxu0 %v2922_v8 }
 0x136   :  { %2542 = vmatpush3.bf16.msra.mxu1 %v2702_v32  ;;  %v2270_v32 = vld [vmem:[%s3624_s0 + $0x38] sm:$0xff] }
 0x137   :  { %2543 = vmatprep.subr.bf16.mxu1 %v2852_v1 }
 0x138   :  { %744 = vmatpush1.bf16.msra.mxu0 %v2931_v10 }
 0x139   :  { %745 = vmatprep.subr.bf16.mxu0 %v2937_v11 }
 0x13a   :  { %2544 = vmatpush3.bf16.msra.mxu1 %v2703_v33 }
 0x13b   :  { %2545 = vmatprep.subr.bf16.mxu1 %v2852_v1 }
 0x13c   :  { %746 = vmatpush1.bf16.msra.mxu0 %v2946_v13 }
 0x13d   :  { %747 = vmatprep.subr.bf16.mxu0 %v2952_v14 }
 0x13e   :  { %2546 = vmatpush3.bf16.msra.mxu1 %v2704_v34 }
 0x13f   :  { %2547 = vmatprep.subr.bf16.mxu1 %v2852_v1 }
 0x140   :  { %748 = vmatpush1.bf16.msra.mxu0 %v2961_v16 }
 0x141   :  { %749 = vmatprep.subr.bf16.mxu0 %v2967_v17 }
 0x142   :  { %2548 = vmatpush3.bf16.msra.mxu1 %v2705_v35 }
 0x143   :  { %2549 = vmatprep.subr.bf16.mxu1 %v2852_v1 }
 0x144   :  { %750 = vmatpush1.bf16.msra.mxu0 %v2977_v19 }
 0x145   :  { %751 = vmatprep.subr.bf16.mxu0 %v2983_v20 }
 0x146   :  { %2550 = vmatpush3.bf16.msra.mxu1 %v2706_v36 }
 0x147   :  { %2551 = vmatprep.subr.bf16.mxu1 %v2852_v1 }
 0x148   :  { %752 = vmatpush1.bf16.msra.mxu0 %v2993_v22 }
 0x149   :  { %1005 = vmatprep.subr.bf16.mxu0 %v2883_v0 }
 0x14a   :  { %2552 = vmatpush3.bf16.msra.mxu1 %v2707_v37 }
 0x14b   :  { %2557 = vmatprep.subr.bf16.mxu1 %v2852_v1 }
 0x1fe   :  { %v503_v38 = vpop.f32.mrb[4].mxu0  ;;  %v544_v41 = vpop.f32.mrb[4].mxu1 }
 0x1ff   :  { %v504_v42 = vadd.f32 %v503_v38, %v3074_v40  ;;  %v505_v43 = vpop.f32.mrb[5].mxu0  ;;  %v2535_v44 = vpop.f32.mrb[5].mxu1  ;;  %v545_v59 = vadd.f32 %v544_v41, %v3086_v62  ;;  %v2271_v41 = vld [vmem:[%s3624_s0 + $0x40] sm:$0xff] }
 0x200   :  { %v507_v45 = vpop.f32.mrb[6].mxu0  ;;  %v547_v46 = vpop.f32.mrb[6].mxu1  ;;  %v506_v52 = vadd.f32 %v505_v43, %v3080_v48 }
 0x201   :  { %v554_v47 = vadd.f32 %v2239_v39, %v504_v42  ;;  %v508_v49 = vpop.f32.mrb[7].mxu0  ;;  %v2536_v50 = vpop.f32.mrb[7].mxu1 }
 0x202   :  { %v561_v54 = vadd.f32 %v2240_v53, %v506_v52  ;;  %v2716_v52 = vld [vmem:[%s3621_s1 + $0x8] ss:$12 sps:$4 sm:$0xff]  }
 0x203   :  { %v2242_v51 = vmul.f32 -1.442695, %v554_v47  ;;  %v3255_v53 = vld [vmem:[%s3621_s1 + $0x1c] ss:$12 sps:$4 sm:$0xff]  }
 0x204   :  { %v2243_v55 = vmul.f32 -1.442695, %v561_v54  ;;  %v2720_v54 = vld [vmem:[%s3621_s1 + $0x20] ss:$12 sps:$4 sm:$0xff]  }
 0x205   :  { %2782 = vpow2.f32 %v2242_v51 }
 0x206   :  { %2784 = vpow2.f32 %v2243_v55  ;;  %v3271_v55 = vld [vmem:[%s3621_s1 + $0x34] ss:$12 sps:$4 sm:$0xff]  }
 0x20f   :  { %v2783_v56 = vpop.eup %2782 }
 0x210   :  { %v558_v57 = vadd.f32 1.0, %v2783_v56  ;;  %v2785_v58 = vpop.eup %2784  ;;  %v3277_v56 = vld [vmem:[%s3621_s1 + $0x30] ss:$12 sps:$4 sm:$0xff]  }
 0x211   :  { %v565_v12 = vadd.f32 1.0, %v2785_v58  ;;  %v3287_v58 = vld [vmem:[%s3621_s1 + $0x4c] ss:$12 sps:$4 sm:$0xff]  }
 0x212   :  { %2786 = vrcp.f32 %v558_v57  ;;  %v2724_v57 = vld [vmem:[%s3621_s1 + $0x38] ss:$12 sps:$4 sm:$0xff]  }
 0x21c   :  { %v2787_v60 = vpop.eup %2786 }
 0x21d   :  { %v568_v63 = vmul.f32 %v2787_v60, %v545_v59  ;;  %v3293_v59 = vld [vmem:[%s3621_s1 + $0x48] ss:$12 sps:$4 sm:$0xff]   ;;  %v2728_v60 = vld [vmem:[%s3621_s1 + $0x50] ss:$12 sps:$4 sm:$0xff]  }
 0x21f   :  { %v569_v9 = vadd.f32 %v2241_v61, %v568_v63  ;;  %v3303_v61 = vld [vmem:[%s3621_s1 + $0x60] ss:$12 sps:$4 sm:$0xff]   ;;  %v3308_v63 = vld [vmem:[%s3621_s1 + $0x64] ss:$12 sps:$4 sm:$0xff]  }
 0x221   :  { %2788 = vtanh.f32 %v569_v9  ;;  %v2732_v9 = vld [vmem:[%s3621_s1 + $0x68] ss:$12 sps:$4 sm:$0xff]  }
 0x222   :  { %2790 = vrcp.f32 %v565_v12  ;;  %v3317_v12 = vld [vmem:[%s3621_s1 + $0x7c] ss:$12 sps:$4 sm:$0xff]  }
 0x22b   :  { %v2789_v15 = vpop.eup %2788 }
 0x22c   :  { %v571_v18 = vsub.f32 %v3093_v29, %v2789_v15  ;;  %v2791_v21 = vpop.eup %2790 }
 0x22e   :  { %v572_v24 = vmul.f32 %v2791_v21, %v571_v18  ;;  %v2736_v18 = vld [vmem:[%s3621_s1 + $0x80] ss:$12 sps:$4 sm:$0xff]  }
 0x22f   :  { %v3334_v21 = vld [vmem:[%s3621_s1 + $0x94] ss:$12 sps:$4 sm:$0xff]  }
 0x230   :  { %v3165_v25 = vadd.f32 %v2789_v15, %v572_v24  ;;  %v3324_v15 = vld [vmem:[%s3621_s1 + $0x78] ss:$12 sps:$4 sm:$0xff]   ;;  %v3340_v24 = vld [vmem:[%s3621_s1 + $0x90] ss:$12 sps:$4 sm:$0xff]  }
 0x232   :  { %2244 = vst [vmem:[%s3625_s4 + $0x8] sm:$0xff] %v3165_v25  ;;  %v576_v26 = vpack.c.bf16 %v3165_v25, %v3165_v25 }
 0x234   :  { %770 = vmatmul.mubr.bf16.vlgmr.msra.gmra.mrb[8].mxu0 %v576_v26  ;;  %2554 = vmatmul.mubr.bf16.vlgmr.msra.gmra.mrb[8].mxu1 %v576_v26  ;;  %v3350_v26 = vld [vmem:[%s3621_s1 + $0xac] ss:$12 sps:$4 sm:$0xff]  }
 0x235   :  { %1006 = vmatpush1.bf16.msra.mxu0 %v2890_v3  ;;  %1037 = vmatprep.mubr.bf16.mxu0 %v2853_v2 }
 0x236   :  { %1007 = vmatprep.subr.bf16.mxu0 %v2898_v4  ;;  %2573 = vmatprep.mubr.msk.bf16.mxu1 %vm2854_vm0, %v2852_v1  ;;  %v2708_v4 = vld [vmem:[%s3621_s1 + $0x8] ss:$12 sps:$4 sm:$0xff]  }
 0x237   :  { %2558 = vmatpush3.bf16.msra.mxu1 %v2708_v4  ;;  %v3356_v4 = vld [vmem:[%s3621_s1 + $0xa8] ss:$12 sps:$4 sm:$0xff]  }
 0x238   :  { %2559 = vmatprep.subr.bf16.mxu1 %v2852_v1 }
 0x239   :  { %1008 = vmatpush1.bf16.msra.mxu0 %v2904_v5  ;;  %v2709_v5 = vld [vmem:[%s3621_s1 + $0x20] ss:$12 sps:$4 sm:$0xff]  }
 0x23a   :  { %1009 = vmatprep.subr.bf16.mxu0 %v2910_v6  ;;  %v2710_v6 = vld [vmem:[%s3621_s1 + $0x38] ss:$12 sps:$4 sm:$0xff]  }
 0x23b   :  { %2560 = vmatpush3.bf16.msra.mxu1 %v2709_v5  ;;  %v2744_v5 = vld [vmem:[%s3621_s1 + $0xb0] ss:$12 sps:$4 sm:$0xff]  }
 0x23c   :  { %2561 = vmatprep.subr.bf16.mxu1 %v2852_v1 }
 0x23d   :  { %1010 = vmatpush1.bf16.msra.mxu0 %v2916_v7  ;;  %v2712_v7 = vld [vmem:[%s3621_s1 + $0x68] ss:$12 sps:$4 sm:$0xff]  }
 0x23e   :  { %1011 = vmatprep.subr.bf16.mxu0 %v2922_v8  ;;  %v2713_v8 = vld [vmem:[%s3621_s1 + $0x80] ss:$12 sps:$4 sm:$0xff]  }
 0x23f   :  { %2562 = vmatpush3.bf16.msra.mxu1 %v2710_v6 }
 0x240   :  { %2563 = vmatprep.subr.bf16.mxu1 %v2852_v1 }
 0x241   :  { %1012 = vmatpush1.bf16.msra.mxu0 %v2931_v10  ;;  %v2714_v10 = vld [vmem:[%s3621_s1 + $0x98] ss:$12 sps:$4 sm:$0xff]  }
 0x242   :  { %1013 = vmatprep.subr.bf16.mxu0 %v2937_v11  ;;  %v2715_v11 = vld [vmem:[%s3621_s1 + $0xb0] ss:$12 sps:$4 sm:$0xff]  }
 0x245   :  { %1014 = vmatpush1.bf16.msra.mxu0 %v2946_v13 }
 0x246   :  { %1015 = vmatprep.subr.bf16.mxu0 %v2952_v14  ;;  %v2269_v14 = vld [vmem:[%s3624_s0 + $0x30] sm:$0xff] }
 0x249   :  { %1016 = vmatpush1.bf16.msra.mxu0 %v2961_v16 }
 0x24a   :  { %1017 = vmatprep.subr.bf16.mxu0 %v2967_v17 }
 0x24d   :  { %1018 = vmatpush1.bf16.msra.mxu0 %v2977_v19 }
 0x24e   :  { %1019 = vmatprep.subr.bf16.mxu0 %v2983_v20 }
 0x251   :  { %1020 = vmatpush1.bf16.msra.mxu0 %v2993_v22 }
 0x252   :  { %1273 = vmatprep.subr.bf16.mxu0 %v2883_v0  ;;  %v2711_v0 = vld [vmem:[%s3621_s1 + $0x50] ss:$12 sps:$4 sm:$0xff]  }
 0x253   :  { %2564 = vmatpush3.bf16.msra.mxu1 %v2711_v0  ;;  %v2299_v0 = vld [vmem:[%s3624_s0 + $0x48] sm:$0xff] }
 0x254   :  { %2565 = vmatprep.subr.bf16.mxu1 %v2852_v1 }
 0x257   :  { %2566 = vmatpush3.bf16.msra.mxu1 %v2712_v7 }
 0x258   :  { %2567 = vmatprep.subr.bf16.mxu1 %v2852_v1 }
 0x25b   :  { %2568 = vmatpush3.bf16.msra.mxu1 %v2713_v8 }
 0x25c   :  { %2569 = vmatprep.subr.bf16.mxu1 %v2852_v1 }
 0x25f   :  { %2570 = vmatpush3.bf16.msra.mxu1 %v2714_v10 }
 0x260   :  { %2571 = vmatprep.subr.bf16.mxu1 %v2852_v1 }
 0x263   :  { %2572 = vmatpush3.bf16.msra.mxu1 %v2715_v11 }
 0x264   :  { %2577 = vmatprep.subr.bf16.mxu1 %v2852_v1 }
 0x307   :  { %v771_v13 = vpop.f32.mrb[8].mxu0  ;;  %v812_v16 = vpop.f32.mrb[8].mxu1 }
 0x308   :  { %v772_v17 = vadd.f32 %v771_v13, %v3074_v40  ;;  %v773_v19 = vpop.f32.mrb[9].mxu0  ;;  %v2555_v20 = vpop.f32.mrb[9].mxu1  ;;  %v813_v38 = vadd.f32 %v812_v16, %v3086_v62 }
 0x309   :  { %v775_v22 = vpop.f32.mrb[10].mxu0  ;;  %v815_v27 = vpop.f32.mrb[10].mxu1  ;;  %v774_v31 = vadd.f32 %v773_v19, %v3080_v48 }
 0x30a   :  { %v822_v28 = vadd.f32 %v2269_v14, %v772_v17  ;;  %v776_v29 = vpop.f32.mrb[11].mxu0  ;;  %v2556_v30 = vpop.f32.mrb[11].mxu1  ;;  %v2300_v27 = vld [vmem:[%s3624_s0 + $0x50] sm:$0xff] }
 0x30b   :  { %v829_v33 = vadd.f32 %v2270_v32, %v774_v31 }
 0x30c   :  { %v2272_v23 = vmul.f32 -1.442695, %v822_v28 }
 0x30d   :  { %v2273_v34 = vmul.f32 -1.442695, %v829_v33 }
 0x30e   :  { %2792 = vpow2.f32 %v2272_v23 }
 0x30f   :  { %2794 = vpow2.f32 %v2273_v34  ;;  %v2301_v34 = vld [vmem:[%s3624_s0 + $0x58] sm:$0xff] }
 0x318   :  { %v2793_v35 = vpop.eup %2792 }
 0x319   :  { %v826_v36 = vadd.f32 1.0, %v2793_v35  ;;  %v2795_v37 = vpop.eup %2794 }
 0x31a   :  { %v833_v44 = vadd.f32 1.0, %v2795_v37 }
 0x31b   :  { %2796 = vrcp.f32 %v826_v36 }
 0x325   :  { %v2797_v39 = vpop.eup %2796 }
 0x326   :  { %v836_v42 = vmul.f32 %v2797_v39, %v813_v38 }
 0x328   :  { %v837_v43 = vadd.f32 %v2271_v41, %v836_v42 }
 0x32a   :  { %2798 = vtanh.f32 %v837_v43 }
 0x32b   :  { %2800 = vrcp.f32 %v833_v44 }
 0x334   :  { %v2799_v45 = vpop.eup %2798 }
 0x335   :  { %v839_v46 = vsub.f32 %v3165_v25, %v2799_v45  ;;  %v2801_v47 = vpop.eup %2800  ;;  %v2740_v25 = vld [vmem:[%s3621_s1 + $0x98] ss:$12 sps:$4 sm:$0xff]  }
 0x337   :  { %v840_v49 = vmul.f32 %v2801_v47, %v839_v46  ;;  %v3397_v46 = vld [vmem:[%s3621_s1] ss:$12 sps:$4 sm:$0xff]   ;;  %v2748_v47 = vld [vmem:[%s3621_s1 + $0x8] ss:$12 sps:$4 sm:$0xff]  }
 0x339   :  { %v3237_v50 = vadd.f32 %v2799_v45, %v840_v49  ;;  %v3392_v45 = vld [vmem:[%s3621_s1 + $0x4] ss:$12 sps:$4 sm:$0xff]   ;;  %v2749_v49 = vld [vmem:[%s3621_s1 + $0x20] ss:$12 sps:$4 sm:$0xff]  }
 0x33b   :  { %2274 = vst [vmem:[%s3625_s4 + $0x10] sm:$0xff] %v3237_v50  ;;  %v844_v51 = vpack.c.bf16 %v3237_v50, %v3237_v50 }
 0x33d   :  { %1038 = vmatmul.mubr.bf16.vlgmr.msra.gmra.mrb[12].mxu0 %v844_v51  ;;  %2574 = vmatmul.mubr.bf16.vlgmr.msra.gmra.mrb[12].mxu1 %v844_v51  ;;  %v2751_v51 = vld [vmem:[%s3621_s1 + $0x50] ss:$12 sps:$4 sm:$0xff]  }
 0x33e   :  { %1274 = vmatpush1.bf16.msra.mxu0 %v2890_v3  ;;  %1305 = vmatprep.mubr.bf16.mxu0 %v2853_v2  ;;  %v3261_v3 = vld [vmem:[%s3621_s1 + $0x18] ss:$12 sps:$4 sm:$0xff]  }
 0x33f   :  { %2593 = vmatprep.mubr.msk.bf16.mxu1 %vm2854_vm0, %v2852_v1  ;;  %2578 = vmatpush3.bf16.msra.mxu1 %v2716_v52  ;;  %v2752_v52 = vld [vmem:[%s3621_s1 + $0x68] ss:$12 sps:$4 sm:$0xff]  }
 0x340   :  { %2579 = vmatprep.subr.bf16.mxu1 %v2852_v1  ;;  %1275 = vmatprep.subr.bf16.mxu0 %v3255_v53 }
 0x342   :  { %1276 = vmatpush1.bf16.msra.mxu0 %v3261_v3 }
 0x343   :  { %2580 = vmatpush3.bf16.msra.mxu1 %v2720_v54  ;;  %1277 = vmatprep.subr.bf16.mxu0 %v3271_v55  ;;  %v2753_v54 = vld [vmem:[%s3621_s1 + $0x80] ss:$12 sps:$4 sm:$0xff]  }
 0x344   :  { %2581 = vmatprep.subr.bf16.mxu1 %v2852_v1 }
 0x346   :  { %1278 = vmatpush1.bf16.msra.mxu0 %v3277_v56 }
 0x347   :  { %2582 = vmatpush3.bf16.msra.mxu1 %v2724_v57  ;;  %1279 = vmatprep.subr.bf16.mxu0 %v3287_v58  ;;  %v2754_v57 = vld [vmem:[%s3621_s1 + $0x98] ss:$12 sps:$4 sm:$0xff]  }
 0x348   :  { %2583 = vmatprep.subr.bf16.mxu1 %v2852_v1 }
 0x34a   :  { %1280 = vmatpush1.bf16.msra.mxu0 %v3293_v59 }
 0x34b   :  { %2584 = vmatpush3.bf16.msra.mxu1 %v2728_v60  ;;  %1281 = vmatprep.subr.bf16.mxu0 %v3308_v63  ;;  %v2755_v60 = vld [vmem:[%s3621_s1 + $0xb0] ss:$12 sps:$4 sm:$0xff]  }
 0x34c   :  { %2585 = vmatprep.subr.bf16.mxu1 %v2852_v1 }
 0x34e   :  { %1282 = vmatpush1.bf16.msra.mxu0 %v3303_v61 }
 0x34f   :  { %2586 = vmatpush3.bf16.msra.mxu1 %v2732_v9  ;;  %1283 = vmatprep.subr.bf16.mxu0 %v3317_v12 }
 0x350   :  { %2587 = vmatprep.subr.bf16.mxu1 %v2852_v1 }
 0x352   :  { %1284 = vmatpush1.bf16.msra.mxu0 %v3324_v15 }
 0x353   :  { %2588 = vmatpush3.bf16.msra.mxu1 %v2736_v18  ;;  %1285 = vmatprep.subr.bf16.mxu0 %v3334_v21  ;;  %v2329_v18 = vld [vmem:[%s3624_s0 + $0x60] sm:$0xff] }
 0x354   :  { %2589 = vmatprep.subr.bf16.mxu1 %v2852_v1 }
 0x356   :  { %1286 = vmatpush1.bf16.msra.mxu0 %v3340_v24 }
 0x357   :  { %2590 = vmatpush3.bf16.msra.mxu1 %v2740_v25  ;;  %1287 = vmatprep.subr.bf16.mxu0 %v3350_v26 }
 0x358   :  { %2591 = vmatprep.subr.bf16.mxu1 %v2852_v1 }
 0x35a   :  { %1288 = vmatpush1.bf16.msra.mxu0 %v3356_v4 }
 0x35b   :  { %2592 = vmatpush3.bf16.msra.mxu1 %v2744_v5  ;;  %1541 = vmatprep.subr.bf16.mxu0 %v3392_v45 }
 0x35c   :  { %2597 = vmatprep.subr.bf16.mxu1 %v2852_v1 }
 0x410   :  { %v1039_v6 = vpop.f32.mrb[12].mxu0  ;;  %v1080_v7 = vpop.f32.mrb[12].mxu1 }
 0x411   :  { %v1040_v8 = vadd.f32 %v1039_v6, %v3074_v40  ;;  %v1041_v10 = vpop.f32.mrb[13].mxu0  ;;  %v2575_v11 = vpop.f32.mrb[13].mxu1  ;;  %v1081_v32 = vadd.f32 %v1080_v7, %v3086_v62 }
 0x412   :  { %v1043_v13 = vpop.f32.mrb[14].mxu0  ;;  %v1083_v14 = vpop.f32.mrb[14].mxu1  ;;  %v1042_v22 = vadd.f32 %v1041_v10, %v3080_v48 }
 0x413   :  { %v1090_v16 = vadd.f32 %v2299_v0, %v1040_v8  ;;  %v1044_v17 = vpop.f32.mrb[15].mxu0  ;;  %v2576_v19 = vpop.f32.mrb[15].mxu1 }
 0x414   :  { %v1097_v28 = vadd.f32 %v2300_v27, %v1042_v22  ;;  %v2330_v17 = vld [vmem:[%s3624_s0 + $0x68] sm:$0xff] }
 0x415   :  { %v2302_v20 = vmul.f32 -1.442695, %v1090_v16 }
 0x416   :  { %v2303_v29 = vmul.f32 -1.442695, %v1097_v28 }
 0x417   :  { %2802 = vpow2.f32 %v2302_v20 }
 0x418   :  { %2804 = vpow2.f32 %v2303_v29 }
 0x421   :  { %v2803_v30 = vpop.eup %2802 }
 0x422   :  { %v1094_v23 = vadd.f32 1.0, %v2803_v30  ;;  %v2805_v31 = vpop.eup %2804 }
 0x423   :  { %v1101_v37 = vadd.f32 1.0, %v2805_v31 }
 0x424   :  { %2806 = vrcp.f32 %v1094_v23  ;;  %v2331_v23 = vld [vmem:[%s3624_s0 + $0x70] sm:$0xff] }
 0x42e   :  { %v2807_v33 = vpop.eup %2806 }
 0x42f   :  { %v1104_v35 = vmul.f32 %v2807_v33, %v1081_v32 }
 0x431   :  { %v1105_v36 = vadd.f32 %v2301_v34, %v1104_v35 }
 0x433   :  { %2808 = vtanh.f32 %v1105_v36 }
 0x434   :  { %2810 = vrcp.f32 %v1101_v37 }
 0x43d   :  { %v2809_v38 = vpop.eup %2808 }
 0x43e   :  { %v1107_v39 = vsub.f32 %v3237_v50, %v2809_v38  ;;  %v2811_v41 = vpop.eup %2810  ;;  %v2750_v50 = vld [vmem:[%s3621_s1 + $0x38] ss:$12 sps:$4 sm:$0xff]  }
 0x440   :  { %v1108_v42 = vmul.f32 %v2811_v41, %v1107_v39  ;;  %v2756_v41 = vld [vmem:[%s3621_s1 + $0x8] ss:$12 sps:$4 sm:$0xff]  }
 0x442   :  { %v3378_v43 = vadd.f32 %v2809_v38, %v1108_v42  ;;  %v2757_v42 = vld [vmem:[%s3621_s1 + $0x20] ss:$12 sps:$4 sm:$0xff]  }
 0x444   :  { %2304 = vst [vmem:[%s3625_s4 + $0x18] sm:$0xff] %v3378_v43  ;;  %v1112_v44 = vpack.c.bf16 %v3378_v43, %v3378_v43 }
 0x446   :  { %1306 = vmatmul.mubr.bf16.vlgmr.msra.gmra.mrb[16].mxu0 %v1112_v44  ;;  %2594 = vmatmul.mubr.bf16.vlgmr.msra.gmra.mrb[16].mxu1 %v1112_v44  ;;  %v2759_v44 = vld [vmem:[%s3621_s1 + $0x50] ss:$12 sps:$4 sm:$0xff]  }
 0x447   :  { %1573 = vmatprep.mubr.bf16.mxu0 %v2853_v2  ;;  %2613 = vmatprep.mubr.msk.bf16.mxu1 %vm2854_vm0, %v2852_v1 }
 0x448   :  { %1542 = vmatpush1.bf16.msra.mxu0 %v3397_v46  ;;  %2598 = vmatpush3.bf16.msra.mxu1 %v2748_v47  ;;  %v2761_v47 = vld [vmem:[%s3621_s1 + $0x80] ss:$12 sps:$4 sm:$0xff]  }
 0x449   :  { %1543 = vmatprep.subr.bf16.mxu0 %v3255_v53  ;;  %2599 = vmatprep.subr.bf16.mxu1 %v2852_v1 }
 0x44c   :  { %1544 = vmatpush1.bf16.msra.mxu0 %v3261_v3  ;;  %2600 = vmatpush3.bf16.msra.mxu1 %v2749_v49  ;;  %v2762_v49 = vld [vmem:[%s3621_s1 + $0x98] ss:$12 sps:$4 sm:$0xff]  }
 0x44d   :  { %1545 = vmatprep.subr.bf16.mxu0 %v3271_v55  ;;  %2601 = vmatprep.subr.bf16.mxu1 %v2852_v1 }
 0x450   :  { %1546 = vmatpush1.bf16.msra.mxu0 %v3277_v56  ;;  %2602 = vmatpush3.bf16.msra.mxu1 %v2750_v50  ;;  %v2763_v50 = vld [vmem:[%s3621_s1 + $0xb0] ss:$12 sps:$4 sm:$0xff]  }
 0x451   :  { %1547 = vmatprep.subr.bf16.mxu0 %v3287_v58  ;;  %2603 = vmatprep.subr.bf16.mxu1 %v2852_v1 }
 0x454   :  { %1548 = vmatpush1.bf16.msra.mxu0 %v3293_v59  ;;  %2604 = vmatpush3.bf16.msra.mxu1 %v2751_v51 }
 0x455   :  { %1549 = vmatprep.subr.bf16.mxu0 %v3308_v63  ;;  %2605 = vmatprep.subr.bf16.mxu1 %v2852_v1 }
 0x458   :  { %1550 = vmatpush1.bf16.msra.mxu0 %v3303_v61  ;;  %2606 = vmatpush3.bf16.msra.mxu1 %v2752_v52  ;;  %v2359_v52 = vld [vmem:[%s3624_s0 + $0x78] sm:$0xff] }
 0x459   :  { %1551 = vmatprep.subr.bf16.mxu0 %v3317_v12  ;;  %2607 = vmatprep.subr.bf16.mxu1 %v2852_v1 }
 0x45c   :  { %1552 = vmatpush1.bf16.msra.mxu0 %v3324_v15  ;;  %2608 = vmatpush3.bf16.msra.mxu1 %v2753_v54 }
 0x45d   :  { %1553 = vmatprep.subr.bf16.mxu0 %v3334_v21  ;;  %2609 = vmatprep.subr.bf16.mxu1 %v2852_v1 }
 0x460   :  { %1554 = vmatpush1.bf16.msra.mxu0 %v3340_v24  ;;  %2610 = vmatpush3.bf16.msra.mxu1 %v2754_v57 }
 0x461   :  { %1555 = vmatprep.subr.bf16.mxu0 %v3350_v26  ;;  %2611 = vmatprep.subr.bf16.mxu1 %v2852_v1 }
 0x464   :  { %1556 = vmatpush1.bf16.msra.mxu0 %v3356_v4  ;;  %2612 = vmatpush3.bf16.msra.mxu1 %v2755_v60 }
 0x465   :  { %1809 = vmatprep.subr.bf16.mxu0 %v3392_v45  ;;  %2617 = vmatprep.subr.bf16.mxu1 %v2852_v1 }
 0x519   :  { %v1307_v9 = vpop.f32.mrb[16].mxu0  ;;  %v1348_v25 = vpop.f32.mrb[16].mxu1 }
 0x51a   :  { %v1308_v5 = vadd.f32 %v1307_v9, %v3074_v40  ;;  %v1309_v6 = vpop.f32.mrb[17].mxu0  ;;  %v2595_v0 = vpop.f32.mrb[17].mxu1  ;;  %v1349_v29 = vadd.f32 %v1348_v25, %v3086_v62 }
 0x51b   :  { %v1311_v7 = vpop.f32.mrb[18].mxu0  ;;  %v1351_v8 = vpop.f32.mrb[18].mxu1  ;;  %v1310_v16 = vadd.f32 %v1309_v6, %v3080_v48 }
 0x51c   :  { %v1358_v10 = vadd.f32 %v2329_v18, %v1308_v5  ;;  %v1312_v11 = vpop.f32.mrb[19].mxu0  ;;  %v2596_v13 = vpop.f32.mrb[19].mxu1 }
 0x51d   :  { %v1365_v19 = vadd.f32 %v2330_v17, %v1310_v16 }
 0x51e   :  { %v2332_v14 = vmul.f32 -1.442695, %v1358_v10  ;;  %v2360_v10 = vld [vmem:[%s3624_s0 + $0x80] sm:$0xff] }
 0x51f   :  { %v2333_v20 = vmul.f32 -1.442695, %v1365_v19 }
 0x520   :  { %2812 = vpow2.f32 %v2332_v14 }
 0x521   :  { %2814 = vpow2.f32 %v2333_v20 }
 0x52a   :  { %v2813_v22 = vpop.eup %2812 }
 0x52b   :  { %v1362_v27 = vadd.f32 1.0, %v2813_v22  ;;  %v2815_v28 = vpop.eup %2814  ;;  %v2361_v22 = vld [vmem:[%s3624_s0 + $0x88] sm:$0xff] }
 0x52c   :  { %v1369_v33 = vadd.f32 1.0, %v2815_v28 }
 0x52d   :  { %2816 = vrcp.f32 %v1362_v27 }
 0x537   :  { %v2817_v30 = vpop.eup %2816 }
 0x538   :  { %v1372_v31 = vmul.f32 %v2817_v30, %v1349_v29 }
 0x53a   :  { %v1373_v32 = vadd.f32 %v2331_v23, %v1372_v31 }
 0x53c   :  { %2818 = vtanh.f32 %v1373_v32 }
 0x53d   :  { %2820 = vrcp.f32 %v1369_v33 }
 0x546   :  { %v2819_v34 = vpop.eup %2818 }
 0x547   :  { %v1375_v35 = vsub.f32 %v3378_v43, %v2819_v34  ;;  %v2821_v36 = vpop.eup %2820  ;;  %v2758_v43 = vld [vmem:[%s3621_s1 + $0x38] ss:$12 sps:$4 sm:$0xff]  }
 0x549   :  { %v1376_v37 = vmul.f32 %v2821_v36, %v1375_v35 }
 0x54b   :  { %v3461_v38 = vadd.f32 %v2819_v34, %v1376_v37 }
 0x54d   :  { %2334 = vst [vmem:[%s3625_s4 + $0x20] sm:$0xff] %v3461_v38  ;;  %v1380_v39 = vpack.c.bf16 %v3461_v38, %v3461_v38 }
 0x54f   :  { %1574 = vmatmul.mubr.bf16.vlgmr.msra.gmra.mrb[20].mxu0 %v1380_v39  ;;  %2614 = vmatmul.mubr.bf16.vlgmr.msra.gmra.mrb[20].mxu1 %v1380_v39  ;;  %v2390_v39 = vld [vmem:[%s3624_s0 + $0x98] sm:$0xff] }
 0x550   :  { %1810 = vmatpush1.bf16.msra.mxu0 %v3397_v46  ;;  %1841 = vmatprep.mubr.bf16.mxu0 %v2853_v2 }
 0x551   :  { %1811 = vmatprep.subr.bf16.mxu0 %v3255_v53  ;;  %2633 = vmatprep.mubr.msk.bf16.mxu1 %vm2854_vm0, %v2852_v1 }
 0x552   :  { %2618 = vmatpush3.bf16.msra.mxu1 %v2756_v41 }
 0x553   :  { %2619 = vmatprep.subr.bf16.mxu1 %v2852_v1 }
 0x554   :  { %1812 = vmatpush1.bf16.msra.mxu0 %v3261_v3 }
 0x555   :  { %1813 = vmatprep.subr.bf16.mxu0 %v3271_v55 }
 0x556   :  { %2620 = vmatpush3.bf16.msra.mxu1 %v2757_v42 }
 0x557   :  { %2621 = vmatprep.subr.bf16.mxu1 %v2852_v1 }
 0x558   :  { %1814 = vmatpush1.bf16.msra.mxu0 %v3277_v56 }
 0x559   :  { %1815 = vmatprep.subr.bf16.mxu0 %v3287_v58 }
 0x55a   :  { %2622 = vmatpush3.bf16.msra.mxu1 %v2758_v43 }
 0x55b   :  { %2623 = vmatprep.subr.bf16.mxu1 %v2852_v1 }
 0x55c   :  { %1816 = vmatpush1.bf16.msra.mxu0 %v3293_v59 }
 0x55d   :  { %1817 = vmatprep.subr.bf16.mxu0 %v3308_v63 }
 0x55e   :  { %2624 = vmatpush3.bf16.msra.mxu1 %v2759_v44 }
 0x55f   :  { %2625 = vmatprep.subr.bf16.mxu1 %v2852_v1 }
 0x560   :  { %1818 = vmatpush1.bf16.msra.mxu0 %v3303_v61 }
 0x561   :  { %1819 = vmatprep.subr.bf16.mxu0 %v3317_v12 }
 0x564   :  { %1820 = vmatpush1.bf16.msra.mxu0 %v3324_v15 }
 0x565   :  { %1821 = vmatprep.subr.bf16.mxu0 %v3334_v21 }
 0x568   :  { %1822 = vmatpush1.bf16.msra.mxu0 %v3340_v24 }
 0x569   :  { %1823 = vmatprep.subr.bf16.mxu0 %v3350_v26 }
 0x56c   :  { %1824 = vmatpush1.bf16.msra.mxu0 %v3356_v4 }
 0x56d   :  { %2077 = vmatprep.subr.bf16.mxu0 %v3392_v45  ;;  %v2760_v45 = vld [vmem:[%s3621_s1 + $0x68] ss:$12 sps:$4 sm:$0xff]  }
 0x56e   :  { %2626 = vmatpush3.bf16.msra.mxu1 %v2760_v45 }
 0x56f   :  { %2627 = vmatprep.subr.bf16.mxu1 %v2852_v1 }
 0x572   :  { %2628 = vmatpush3.bf16.msra.mxu1 %v2761_v47 }
 0x573   :  { %2629 = vmatprep.subr.bf16.mxu1 %v2852_v1 }
 0x576   :  { %2630 = vmatpush3.bf16.msra.mxu1 %v2762_v49 }
 0x577   :  { %2631 = vmatprep.subr.bf16.mxu1 %v2852_v1 }
 0x57a   :  { %2632 = vmatpush3.bf16.msra.mxu1 %v2763_v50  ;;  %v2391_v50 = vld [vmem:[%s3624_s0 + $0xa0] sm:$0xff] }
 0x57b   :  { %2637 = vmatprep.subr.bf16.mxu1 %v2852_v1 }
 0x622   :  { %v1575_v51 = vpop.f32.mrb[20].mxu0  ;;  %v1616_v54 = vpop.f32.mrb[20].mxu1 }
 0x623   :  { %v1576_v57 = vadd.f32 %v1575_v51, %v3074_v40  ;;  %v1577_v60 = vpop.f32.mrb[21].mxu0  ;;  %v2615_v9 = vpop.f32.mrb[21].mxu1  ;;  %v1617_v19 = vadd.f32 %v1616_v54, %v3086_v62 }
 0x624   :  { %v1579_v18 = vpop.f32.mrb[22].mxu0  ;;  %v1619_v25 = vpop.f32.mrb[22].mxu1  ;;  %v1578_v8 = vadd.f32 %v1577_v60, %v3080_v48 }
 0x625   :  { %v1626_v5 = vadd.f32 %v2359_v52, %v1576_v57  ;;  %v1580_v6 = vpop.f32.mrb[23].mxu0  ;;  %v2616_v0 = vpop.f32.mrb[23].mxu1 }
 0x626   :  { %v1633_v11 = vadd.f32 %v2360_v10, %v1578_v8  ;;  %v2419_v0 = vld [vmem:[%s3624_s0 + $0xa8] sm:$0xff] }
 0x627   :  { %v2362_v7 = vmul.f32 -1.442695, %v1626_v5 }
 0x628   :  { %v2363_v13 = vmul.f32 -1.442695, %v1633_v11 }
 0x629   :  { %2822 = vpow2.f32 %v2362_v7 }
 0x62a   :  { %2824 = vpow2.f32 %v2363_v13 }
 0x633   :  { %v2823_v14 = vpop.eup %2822 }
 0x634   :  { %v1630_v16 = vadd.f32 1.0, %v2823_v14  ;;  %v2825_v17 = vpop.eup %2824 }
 0x635   :  { %v1637_v29 = vadd.f32 1.0, %v2825_v17 }
 0x636   :  { %2826 = vrcp.f32 %v1630_v16 }
 0x640   :  { %v2827_v20 = vpop.eup %2826 }
 0x641   :  { %v1640_v27 = vmul.f32 %v2827_v20, %v1617_v19 }
 0x643   :  { %v1641_v28 = vadd.f32 %v2361_v22, %v1640_v27  ;;  %v2420_v27 = vld [vmem:[%s3624_s0 + $0xb0] sm:$0xff] }
 0x645   :  { %2828 = vtanh.f32 %v1641_v28 }
 0x646   :  { %2830 = vrcp.f32 %v1637_v29 }
 0x64f   :  { %v2829_v30 = vpop.eup %2828 }
 0x650   :  { %v1643_v23 = vsub.f32 %v3461_v38, %v2829_v30  ;;  %v2831_v31 = vpop.eup %2830 }
 0x652   :  { %v1644_v32 = vmul.f32 %v2831_v31, %v1643_v23 }
 0x654   :  { %v3533_v33 = vadd.f32 %v2829_v30, %v1644_v32 }
 0x656   :  { %2364 = vst [vmem:[%s3625_s4 + $0x28] sm:$0xff] %v3533_v33  ;;  %v1648_v34 = vpack.c.bf16 %v3533_v33, %v3533_v33 }
 0x658   :  { %1842 = vmatmul.mubr.bf16.vlgmr.msra.gmra.mrb[24].mxu0 %v1648_v34  ;;  %2634 = vmatmul.mubr.bf16.vlgmr.msra.gmra.mrb[24].mxu1 %v1648_v34 }
 0x659   :  { %2078 = vmatpush1.bf16.msra.mxu0 %v3397_v46  ;;  %2109 = vmatprep.mubr.bf16.mxu0 %v2853_v2  ;;  %v2764_v2 = vld [vmem:[%s3621_s1 + $0x8] ss:$12 sps:$4 sm:$0xff]  }
 0x65a   :  { %2079 = vmatprep.subr.bf16.mxu0 %v3255_v53  ;;  %2653 = vmatprep.mubr.msk.bf16.mxu1 %vm2854_vm0, %v2852_v1  ;;  %v2765_v53 = vld [vmem:[%s3621_s1 + $0x20] ss:$12 sps:$4 sm:$0xff]  }
 0x65b   :  { %2638 = vmatpush3.bf16.msra.mxu1 %v2764_v2 }
 0x65c   :  { %2639 = vmatprep.subr.bf16.mxu1 %v2852_v1 }
 0x65d   :  { %2080 = vmatpush1.bf16.msra.mxu0 %v3261_v3  ;;  %v2766_v3 = vld [vmem:[%s3621_s1 + $0x38] ss:$12 sps:$4 sm:$0xff]  }
 0x65e   :  { %2081 = vmatprep.subr.bf16.mxu0 %v3271_v55  ;;  %v2767_v55 = vld [vmem:[%s3621_s1 + $0x50] ss:$12 sps:$4 sm:$0xff]  }
 0x65f   :  { %2640 = vmatpush3.bf16.msra.mxu1 %v2765_v53 }
 0x660   :  { %2641 = vmatprep.subr.bf16.mxu1 %v2852_v1 }
 0x661   :  { %2082 = vmatpush1.bf16.msra.mxu0 %v3277_v56  ;;  %v2768_v56 = vld [vmem:[%s3621_s1 + $0x68] ss:$12 sps:$4 sm:$0xff]  }
 0x662   :  { %2083 = vmatprep.subr.bf16.mxu0 %v3287_v58  ;;  %v2769_v58 = vld [vmem:[%s3621_s1 + $0x80] ss:$12 sps:$4 sm:$0xff]  }
 0x663   :  { %2642 = vmatpush3.bf16.msra.mxu1 %v2766_v3 }
 0x664   :  { %2643 = vmatprep.subr.bf16.mxu1 %v2852_v1 }
 0x665   :  { %2084 = vmatpush1.bf16.msra.mxu0 %v3293_v59  ;;  %v2770_v59 = vld [vmem:[%s3621_s1 + $0x98] ss:$12 sps:$4 sm:$0xff]  }
 0x666   :  { %2085 = vmatprep.subr.bf16.mxu0 %v3308_v63 }
 0x667   :  { %2644 = vmatpush3.bf16.msra.mxu1 %v2767_v55 }
 0x668   :  { %2645 = vmatprep.subr.bf16.mxu1 %v2852_v1 }
 0x669   :  { %2086 = vmatpush1.bf16.msra.mxu0 %v3303_v61  ;;  %v2771_v61 = vld [vmem:[%s3621_s1 + $0xb0] ss:$12 sps:$4 sm:$0xff]  }
 0x66a   :  { %2087 = vmatprep.subr.bf16.mxu0 %v3317_v12  ;;  %v2389_v12 = vld [vmem:[%s3624_s0 + $0x90] sm:$0xff] }
 0x66b   :  { %2646 = vmatpush3.bf16.msra.mxu1 %v2768_v56 }
 0x66c   :  { %2647 = vmatprep.subr.bf16.mxu1 %v2852_v1 }
 0x66d   :  { %2088 = vmatpush1.bf16.msra.mxu0 %v3324_v15 }
 0x66e   :  { %2089 = vmatprep.subr.bf16.mxu0 %v3334_v21 }
 0x66f   :  { %2648 = vmatpush3.bf16.msra.mxu1 %v2769_v58 }
 0x670   :  { %2649 = vmatprep.subr.bf16.mxu1 %v2852_v1 }
 0x671   :  { %2090 = vmatpush1.bf16.msra.mxu0 %v3340_v24 }
 0x672   :  { %2091 = vmatprep.subr.bf16.mxu0 %v3350_v26 }
 0x673   :  { %2650 = vmatpush3.bf16.msra.mxu1 %v2770_v59 }
 0x674   :  { %2651 = vmatprep.subr.bf16.mxu1 %v2852_v1 }
 0x675   :  { %2092 = vmatpush1.bf16.msra.mxu0 %v3356_v4 }
 0x677   :  { %2652 = vmatpush3.bf16.msra.mxu1 %v2771_v61 }
 0x72b   :  { %v1843_v63 = vpop.f32.mrb[24].mxu0  ;;  %v1884_v15 = vpop.f32.mrb[24].mxu1 }
 0x72c   :  { %v1844_v21 = vadd.f32 %v1843_v63, %v3074_v40  ;;  %v1845_v24 = vpop.f32.mrb[25].mxu0  ;;  %v2635_v26 = vpop.f32.mrb[25].mxu1  ;;  %v1885_v47 = vadd.f32 %v1884_v15, %v3086_v62 }
 0x72d   :  { %v1847_v4 = vpop.f32.mrb[26].mxu0  ;;  %v1887_v46 = vpop.f32.mrb[26].mxu1  ;;  %v1846_v1 = vadd.f32 %v1845_v24, %v3080_v48 }
 0x72e   :  { %v1894_v35 = vadd.f32 %v2389_v12, %v1844_v21  ;;  %v1848_v36 = vpop.f32.mrb[27].mxu0  ;;  %v2636_v37 = vpop.f32.mrb[27].mxu1 }
 0x72f   :  { %v1901_v41 = vadd.f32 %v2390_v39, %v1846_v1 }
 0x730   :  { %v2392_v38 = vmul.f32 -1.442695, %v1894_v35 }
 0x731   :  { %v2393_v42 = vmul.f32 -1.442695, %v1901_v41 }
 0x732   :  { %2832 = vpow2.f32 %v2392_v38 }
 0x733   :  { %2834 = vpow2.f32 %v2393_v42 }
 0x73c   :  { %v2833_v43 = vpop.eup %2832 }
 0x73d   :  { %v1898_v44 = vadd.f32 1.0, %v2833_v43  ;;  %v2835_v45 = vpop.eup %2834 }
 0x73e   :  { %v1905_v54 = vadd.f32 1.0, %v2835_v45 }
 0x73f   :  { %2836 = vrcp.f32 %v1898_v44 }
 0x749   :  { %v2837_v49 = vpop.eup %2836 }
 0x74a   :  { %v1908_v51 = vmul.f32 %v2837_v49, %v1885_v47 }
 0x74c   :  { %v1909_v52 = vadd.f32 %v2391_v50, %v1908_v51 }
 0x74e   :  { %2838 = vtanh.f32 %v1909_v52 }
 0x74f   :  { %2840 = vrcp.f32 %v1905_v54 }
 0x758   :  { %v2839_v57 = vpop.eup %2838 }
 0x759   :  { %v1911_v60 = vsub.f32 %v3533_v33, %v2839_v57  ;;  %v2841_v9 = vpop.eup %2840  ;;  %v2421_v33 = vld [vmem:[%s3624_s0 + $0xb8] sm:$0xff] }
 0x75b   :  { %v1912_v18 = vmul.f32 %v2841_v9, %v1911_v60 }
 0x75d   :  { %v1913_v25 = vadd.f32 %v2839_v57, %v1912_v18 }
 0x75f   :  { %2394 = vst [vmem:[%s3625_s4 + $0x30] sm:$0xff] %v1913_v25  ;;  %v1916_v5 = vpack.c.bf16 %v1913_v25, %v1913_v25 }
 0x761   :  { %2110 = vmatmul.mubr.bf16.vlgmr.msra.gmra.mrb[28].mxu0 %v1916_v5  ;;  %2654 = vmatmul.mubr.bf16.vlgmr.msra.gmra.mrb[28].mxu1 %v1916_v5 }
 0x834   :  { %v2111_v6 = vpop.f32.mrb[28].mxu0  ;;  %v2152_v7 = vpop.f32.mrb[28].mxu1 }
 0x835   :  { %v2112_v8 = vadd.f32 %v2111_v6, %v3074_v40  ;;  %v2113_v10 = vpop.f32.mrb[29].mxu0  ;;  %v2655_v11 = vpop.f32.mrb[29].mxu1  ;;  %v2153_v31 = vadd.f32 %v2152_v7, %v3086_v62 }
 0x836   :  { %v2115_v13 = vpop.f32.mrb[30].mxu0  ;;  %v2155_v14 = vpop.f32.mrb[30].mxu1  ;;  %v2114_v22 = vadd.f32 %v2113_v10, %v3080_v48 }
 0x837   :  { %v2162_v16 = vadd.f32 %v2419_v0, %v2112_v8  ;;  %v2116_v17 = vpop.f32.mrb[31].mxu0  ;;  %v2656_v19 = vpop.f32.mrb[31].mxu1 }
 0x838   :  { %v2169_v28 = vadd.f32 %v2420_v27, %v2114_v22 }
 0x839   :  { %v2422_v20 = vmul.f32 -1.442695, %v2162_v16 }
 0x83a   :  { %v2423_v29 = vmul.f32 -1.442695, %v2169_v28 }
 0x83b   :  { %2842 = vpow2.f32 %v2422_v20 }
 0x83c   :  { %2844 = vpow2.f32 %v2423_v29 }
 0x845   :  { %v2843_v30 = vpop.eup %2842 }
 0x846   :  { %v2166_v23 = vadd.f32 1.0, %v2843_v30  ;;  %v2845_v40 = vpop.eup %2844 }
 0x847   :  { %v2173_v2 = vadd.f32 1.0, %v2845_v40 }
 0x848   :  { %2846 = vrcp.f32 %v2166_v23 }
 0x852   :  { %v2847_v32 = vpop.eup %2846 }
 0x853   :  { %v2176_v34 = vmul.f32 %v2847_v32, %v2153_v31 }
 0x855   :  { %v2177_v48 = vadd.f32 %v2421_v33, %v2176_v34 }
 0x857   :  { %2848 = vtanh.f32 %v2177_v48 }
 0x858   :  { %2850 = vrcp.f32 %v2173_v2 }
 0x861   :  { %v2849_v53 = vpop.eup %2848 }
 0x862   :  { %v2179_v3 = vsub.f32 %v1913_v25, %v2849_v53  ;;  %v2851_v55 = vpop.eup %2850 }
 0x864   :  { %v2180_v56 = vmul.f32 %v2851_v55, %v2179_v3 }
 0x866   :  { %v2181_v58 = vadd.f32 %v2849_v53, %v2180_v56 }
 0x868   :  { %2424 = vst [vmem:[%s3625_s4 + $0x38] sm:$0xff] %v2181_v58 }

</bundles_post_ra>
